<compile_context>
chip_gen: v7x
topology: tpu7x:2x2x1
jax: 0.10.0
libtpu: 0.0.40
codegen_flags: <defaults>
</compile_context>

<pallas_src>
import jax
import jax.numpy as jnp
import numpy as np
from jax import lax
from jax.experimental import pallas as pl
from jax.experimental.pallas import tpu as pltpu


def _round_up(x, m):
    return ((x + m - 1) // m) * m


def _interp_matrix(out_n, in_n):
    """(out_n, in_n) bilinear interpolation matrix, align_corners=True (numpy f32)."""
    if out_n == 1 or in_n == 1:
        pos = np.zeros((out_n,), np.float64)
    else:
        pos = np.arange(out_n, dtype=np.float64) * (in_n - 1) / (out_n - 1)
    i0 = np.clip(np.floor(pos).astype(np.int64), 0, in_n - 1)
    i1 = np.clip(i0 + 1, 0, in_n - 1)
    frac = (pos - i0).astype(np.float32)
    m = np.zeros((out_n, in_n), np.float32)
    m[np.arange(out_n), i0] += 1.0 - frac
    m[np.arange(out_n), i1] += frac
    return m


# ----------------------------- Pallas kernel -------------------------------
def _cff_kernel(xlw_ref, xh_ref, ah_ref, wlow_ref, whigh_ref, wcls_ref,
                bl_ref, bh_ref, out_x_ref, out_cls_ref):
    _, H, W, Cop = out_x_ref.shape
    _, Hl, Wp, Cl = xlw_ref.shape
    Ch = xh_ref.shape[3]
    ncp = out_cls_ref.shape[3]
    Hp = H + 4

    # Fused H-axis bilinear upsample + dilation-2 zero padding: one MXU matmul
    # against the constant (H+4, H_low) interpolation matrix (zero rows == pad).
    xlw = xlw_ref[0].reshape(Hl, Wp * Cl)                              # bf16
    xp = jnp.dot(ah_ref[...], xlw, preferred_element_type=jnp.float32)
    xp = xp.astype(jnp.bfloat16).reshape(Hp, Wp, Cl)                   # (H+4, W+4, Cl)

    # Dilated 3x3 conv (dilation=2) as a single im2col matmul on the MXU.
    # BN scale is already folded into wlow in the wrapper.
    cols = []
    for kh in range(3):
        for kw in range(3):
            cols.append(
                xp[kh * 2:kh * 2 + H, kw * 2:kw * 2 + W, :].reshape(H * W, Cl))
    patches = jnp.concatenate(cols, axis=-1)                           # (H*W, 9*Cl) bf16
    y_low = jnp.dot(patches, wlow_ref[...],
                    preferred_element_type=jnp.float32) + bl_ref[0]    # (H*W, Cop) f32

    # 1x1 conv on x_high (BN scale folded into whigh) + bias.
    xh = xh_ref[0].reshape(H * W, Ch)                                  # bf16
    y_high = jnp.dot(xh, whigh_ref[...],
                     preferred_element_type=jnp.float32) + bh_ref[0]

    out_x_ref[0] = jnp.maximum(y_low + y_high, 0.0).reshape(H, W, Cop)

    # 1x1 classifier conv on the (post-BN, pre-ReLU) low branch.
    cls = jnp.dot(y_low.astype(jnp.bfloat16), wcls_ref[...],
                  preferred_element_type=jnp.float32)
    out_cls_ref[0] = cls.reshape(H, W, ncp)


# ------------------------------- wrappers -----------------------------------
def cascade_feature_fusion_nhwc(xl, xh, params):
    """xl: (N, Hl, Wl, Cl), xh: (N, H, W, Ch) NHWC f32. Returns NHWC outputs."""
    xl = xl.astype(jnp.float32)
    xh = xh.astype(jnp.float32)
    N, Hl, Wl, Cl = xl.shape
    _, H, W, Ch = xh.shape
    Hp, Wp = H + 4, W + 4

    w_low = params["w_low"]            # (3, 3, Cl, Co)  HWIO
    w_high = params["w_high"]          # (Ch, Co)
    w_cls = params["w_cls"]            # (Co, nclass)
    Co = w_low.shape[-1]
    nclass = w_cls.shape[-1]
    Co_p = _round_up(Co, 128)
    nc_p = _round_up(nclass, 128)

    # --- glue (cheap, low-height): W-axis bilinear upsample + W zero-pad ----
    a_w = jnp.asarray(_interp_matrix(W, Wl))                           # (W, Wl)
    xlw = jnp.einsum("ow,nhwc->nhoc", a_w, xl)                         # (N, Hl, W, Cl)
    xlw = jnp.pad(xlw, ((0, 0), (0, 0), (2, 2), (0, 0))).astype(jnp.bfloat16)

    # H-axis interpolation matrix with 2 zero rows of padding top and bottom.
    a_h_np = np.zeros((Hp, Hl), np.float32)
    a_h_np[2:2 + H, :] = _interp_matrix(H, Hl)
    a_h = jnp.asarray(a_h_np, jnp.bfloat16)                            # (Hp, Hl)

    # --- fold BN scale into weights; pad output channels to lane width -----
    w_low_f = (w_low * params["scale_low"]).reshape(9 * Cl, Co)
    w_low_f = jnp.pad(w_low_f, ((0, 0), (0, Co_p - Co))).astype(jnp.bfloat16)
    w_high_f = jnp.pad(w_high * params["scale_high"],
                       ((0, 0), (0, Co_p - Co))).astype(jnp.bfloat16)
    w_cls_f = jnp.pad(w_cls, ((0, Co_p - Co), (0, nc_p - nclass))).astype(jnp.bfloat16)
    b_low = jnp.pad(params["bias_low"], (0, Co_p - Co)).reshape(1, Co_p)
    b_high = jnp.pad(params["bias_high"], (0, Co_p - Co)).reshape(1, Co_p)

    xh_b = xh.astype(jnp.bfloat16)

    out_shape = (jax.ShapeDtypeStruct((N, H, W, Co_p), jnp.float32),
                 jax.ShapeDtypeStruct((N, H, W, nc_p), jnp.float32))

    # TODO(synk): for production ICNet feature-map sizes add a spatial row grid
    # (with a 4-row halo on the low branch) so per-step blocks fit v7x's 64 MiB
    # VMEM and both TensorCores stay busy; whole-image blocks are fine here.
    out_x, out_cls = pl.pallas_call(
        _cff_kernel,
        out_shape=out_shape,
        grid=(N,),
        in_specs=[
            pl.BlockSpec((1, Hl, Wp, Cl), lambda n: (n, 0, 0, 0)),
            pl.BlockSpec((1, H, W, Ch), lambda n: (n, 0, 0, 0)),
            pl.BlockSpec((Hp, Hl), lambda n: (0, 0)),
            pl.BlockSpec((9 * Cl, Co_p), lambda n: (0, 0)),
            pl.BlockSpec((Ch, Co_p), lambda n: (0, 0)),
            pl.BlockSpec((Co_p, nc_p), lambda n: (0, 0)),
            pl.BlockSpec((1, Co_p), lambda n: (0, 0)),
            pl.BlockSpec((1, Co_p), lambda n: (0, 0)),
        ],
        out_specs=(
            pl.BlockSpec((1, H, W, Co_p), lambda n: (n, 0, 0, 0)),
            pl.BlockSpec((1, H, W, nc_p), lambda n: (n, 0, 0, 0)),
        ),
        compiler_params=pltpu.CompilerParams(dimension_semantics=("parallel",)),
    )(xlw, xh_b, a_h, w_low_f, w_high_f, w_cls_f, b_low, b_high)

    return out_x[..., :Co], out_cls[..., :nclass]


def cascade_feature_fusion(x_low, x_high, params):
    """x_low, x_high NCHW (PyTorch convention). Returns (x, x_low_cls) in NCHW."""
    # TODO(synk): the NCHW<->NHWC transposes are full HBM relayouts; keep the
    # surrounding model in NHWC and call cascade_feature_fusion_nhwc directly.
    xl = jnp.transpose(x_low, (0, 2, 3, 1))
    xh = jnp.transpose(x_high, (0, 2, 3, 1))
    out_x, out_cls = cascade_feature_fusion_nhwc(xl, xh, params)
    return (jnp.transpose(out_x, (0, 3, 1, 2)),
            jnp.transpose(out_cls, (0, 3, 1, 2)))


# -------------------------- deterministic params -----------------------------
def init_params(key, low_channels, high_channels, out_channels, nclass):
    ks = jax.random.split(key, 11)
    eps = 1e-5

    w_low = 0.1 * jax.random.normal(ks[0], (3, 3, low_channels, out_channels), jnp.float32)
    w_high = 0.1 * jax.random.normal(ks[1], (high_channels, out_channels), jnp.float32)
    w_cls = 0.1 * jax.random.normal(ks[2], (out_channels, nclass), jnp.float32)

    def bn_fold(kg, kb, km, kv):
        gamma = 1.0 + 0.1 * jax.random.normal(kg, (out_channels,), jnp.float32)
        beta = 0.1 * jax.random.normal(kb, (out_channels,), jnp.float32)
        mean = 0.1 * jax.random.normal(km, (out_channels,), jnp.float32)
        var = 1.0 + 0.5 * jax.random.uniform(kv, (out_channels,), jnp.float32)
        scale = gamma / jnp.sqrt(var + eps)
        bias = beta - mean * scale
        return scale, bias

    # TODO(synk): BatchNorm reproduced in inference mode (running stats folded);
    # PyTorch training-mode batch statistics are not computed here.
    scale_low, bias_low = bn_fold(ks[3], ks[4], ks[5], ks[6])
    scale_high, bias_high = bn_fold(ks[7], ks[8], ks[9], ks[10])

    return dict(w_low=w_low, w_high=w_high, w_cls=w_cls,
                scale_low=scale_low, bias_low=bias_low,
                scale_high=scale_high, bias_high=bias_high)


# ---------------------------- pure-JAX reference -----------------------------
def _upsample_bilinear_align_corners(x, out_h, out_w):
    """x: (N, H, W, C). Matches F.interpolate(mode='bilinear', align_corners=True)."""
    N, H, W, C = x.shape

    def grid(out_n, in_n):
        if out_n == 1 or in_n == 1:
            return jnp.zeros((out_n,), jnp.float32)
        return jnp.arange(out_n, dtype=jnp.float32) * ((in_n - 1) / (out_n - 1))

    hs = grid(out_h, H)
    ws = grid(out_w, W)
    h0 = jnp.clip(jnp.floor(hs).astype(jnp.int32), 0, H - 1)
    h1 = jnp.clip(h0 + 1, 0, H - 1)
    ah = (hs - h0.astype(jnp.float32))[None, :, None, None]
    w0 = jnp.clip(jnp.floor(ws).astype(jnp.int32), 0, W - 1)
    w1 = jnp.clip(w0 + 1, 0, W - 1)
    aw = (ws - w0.astype(jnp.float32))[None, None, :, None]

    x_h0 = x[:, h0, :, :]
    x_h1 = x[:, h1, :, :]
    top = x_h0[:, :, w0, :] * (1.0 - aw) + x_h0[:, :, w1, :] * aw
    bot = x_h1[:, :, w0, :] * (1.0 - aw) + x_h1[:, :, w1, :] * aw
    return top * (1.0 - ah) + bot * ah


def ref_forward(x_low_nchw, x_high_nchw, params):
    xl = jnp.transpose(x_low_nchw, (0, 2, 3, 1)).astype(jnp.float32)
    xh = jnp.transpose(x_high_nchw, (0, 2, 3, 1)).astype(jnp.float32)
    N, H, W, Ch = xh.shape
    xl_up = _upsample_bilinear_align_corners(xl, H, W)
    y_low = lax.conv_general_dilated(
        xl_up, params["w_low"], window_strides=(1, 1),
        padding=((2, 2), (2, 2)), rhs_dilation=(2, 2),
        dimension_numbers=("NHWC", "HWIO", "NHWC"),
        precision=lax.Precision.HIGHEST)
    y_low = y_low * params["scale_low"] + params["bias_low"]
    y_high = jnp.einsum("nhwc,cd->nhwd", xh, params["w_high"],
                        precision=lax.Precision.HIGHEST)
    y_high = y_high * params["scale_high"] + params["bias_high"]
    x = jnp.maximum(y_low + y_high, 0.0)
    cls = jnp.einsum("nhwc,cd->nhwd", y_low, params["w_cls"],
                     precision=lax.Precision.HIGHEST)
    return (jnp.transpose(x, (0, 3, 1, 2)), jnp.transpose(cls, (0, 3, 1, 2)))


# ----------------------------------- main -------------------------------------
if __name__ == "__main__":
    key = jax.random.PRNGKey(0)
    low_channels, high_channels, out_channels, nclass = 4, 6, 8, 5
    N, H_low, W_low, H_high, W_high = 2, 8, 8, 16, 16

    k1, k2, k3 = jax.random.split(key, 3)
    x_low = jax.random.normal(k1, (N, low_channels, H_low, W_low), jnp.float32)
    x_high = jax.random.normal(k2, (N, high_channels, H_high, W_high), jnp.float32)
    params = init_params(k3, low_channels, high_channels, out_channels, nclass)

    out_x, out_cls = cascade_feature_fusion(x_low, x_high, params)
    jax.block_until_ready((out_x, out_cls))

    assert out_x.shape == (N, out_channels, H_high, W_high)
    assert out_cls.shape == (N, nclass, H_high, W_high)

    ref_x, ref_cls = ref_forward(x_low, x_high, params)
    np.testing.assert_allclose(np.asarray(out_x), np.asarray(ref_x), rtol=2e-2, atol=2e-2)
    np.testing.assert_allclose(np.asarray(out_cls), np.asarray(ref_cls), rtol=2e-2, atol=2e-2)

    print("KERNEL_OK")
</pallas_src>

<mosaic_0001>
module attributes {stable_mosaic.version = 11 : i64} {
  func.func @_cff_kernel(%arg0: i32, %arg1: memref<1x8x20x4xbf16, #tpu.memory_space<vmem>>, %arg2: memref<1x16x16x6xbf16, #tpu.memory_space<vmem>>, %arg3: memref<20x8xbf16, #tpu.memory_space<vmem>>, %arg4: memref<36x128xbf16, #tpu.memory_space<vmem>>, %arg5: memref<6x128xbf16, #tpu.memory_space<vmem>>, %arg6: memref<128x128xbf16, #tpu.memory_space<vmem>>, %arg7: memref<1x128xf32, #tpu.memory_space<vmem>>, %arg8: memref<1x128xf32, #tpu.memory_space<vmem>>, %arg9: memref<1x16x16x128xf32, #tpu.memory_space<vmem>>, %arg10: memref<1x16x16x128xf32, #tpu.memory_space<vmem>>) attributes {dimension_semantics = [#tpu.dimension_semantics<parallel>], iteration_bounds = array<i64: 2>, scalar_prefetch = 0 : i64, scratch_operands = 0 : i64, tpu.core_type = #tpu.core_type<tc>, window_params = [{transform_indices = @transform_0, window_bounds = array<i64: 1, 8, 20, 4>}, {transform_indices = @transform_1, window_bounds = array<i64: 1, 16, 16, 6>}, {pipeline_mode = #tpu.pipeline_mode<synchronous>, transform_indices = @transform_2, window_bounds = array<i64: 20, 8>}, {pipeline_mode = #tpu.pipeline_mode<synchronous>, transform_indices = @transform_3, window_bounds = array<i64: 36, 128>}, {pipeline_mode = #tpu.pipeline_mode<synchronous>, transform_indices = @transform_4, window_bounds = array<i64: 6, 128>}, {pipeline_mode = #tpu.pipeline_mode<synchronous>, transform_indices = @transform_5, window_bounds = array<i64: 128, 128>}, {pipeline_mode = #tpu.pipeline_mode<synchronous>, transform_indices = @transform_6, window_bounds = array<i64: 1, 128>}, {pipeline_mode = #tpu.pipeline_mode<synchronous>, transform_indices = @transform_7, window_bounds = array<i64: 1, 128>}, {transform_indices = @transform_8, window_bounds = array<i64: 1, 16, 16, 128>}, {transform_indices = @transform_9, window_bounds = array<i64: 1, 16, 16, 128>}]} {
    %c0 = arith.constant 0 : index
    %c0_0 = arith.constant 0 : index
    %c0_1 = arith.constant 0 : index
    %c0_2 = arith.constant 0 : index
    %0 = vector.load %arg1[%c0, %c0_0, %c0_1, %c0_2] : memref<1x8x20x4xbf16, #tpu.memory_space<vmem>>, vector<1x8x20x4xbf16>
    %1 = vector.shape_cast %0 : vector<1x8x20x4xbf16> to vector<8x20x4xbf16>
    %2 = vector.shape_cast %1 : vector<8x20x4xbf16> to vector<8x80xbf16>
    %c0_3 = arith.constant 0 : index
    %c0_4 = arith.constant 0 : index
    %3 = vector.load %arg3[%c0_3, %c0_4] : memref<20x8xbf16, #tpu.memory_space<vmem>>, vector<20x8xbf16>
    %cst = arith.constant dense<0.000000e+00> : vector<20x80xf32>
    %4 = tpu.matmul %3, %2, %cst {dimension_numbers = #tpu.dot_dimension_numbers<[1], [0], [0], [1], [0, 0, 1, 1], [], []>} : vector<20x8xbf16>, vector<8x80xbf16>, vector<20x80xf32> -> vector<20x80xf32>
    %5 = arith.truncf %4 : vector<20x80xf32> to vector<20x80xbf16>
    %6 = vector.shape_cast %5 : vector<20x80xbf16> to vector<20x20x4xbf16>
    %7 = vector.extract_strided_slice %6 {offsets = [0, 0, 0], sizes = [16, 16, 4], strides = [1, 1, 1]} : vector<20x20x4xbf16> to vector<16x16x4xbf16>
    %8 = vector.shape_cast %7 : vector<16x16x4xbf16> to vector<256x4xbf16>
    %9 = vector.extract_strided_slice %6 {offsets = [0, 2, 0], sizes = [16, 16, 4], strides = [1, 1, 1]} : vector<20x20x4xbf16> to vector<16x16x4xbf16>
    %10 = vector.shape_cast %9 : vector<16x16x4xbf16> to vector<256x4xbf16>
    %11 = vector.extract_strided_slice %6 {offsets = [0, 4, 0], sizes = [16, 16, 4], strides = [1, 1, 1]} : vector<20x20x4xbf16> to vector<16x16x4xbf16>
    %12 = vector.shape_cast %11 : vector<16x16x4xbf16> to vector<256x4xbf16>
    %13 = vector.extract_strided_slice %6 {offsets = [2, 0, 0], sizes = [16, 16, 4], strides = [1, 1, 1]} : vector<20x20x4xbf16> to vector<16x16x4xbf16>
    %14 = vector.shape_cast %13 : vector<16x16x4xbf16> to vector<256x4xbf16>
    %15 = vector.extract_strided_slice %6 {offsets = [2, 2, 0], sizes = [16, 16, 4], strides = [1, 1, 1]} : vector<20x20x4xbf16> to vector<16x16x4xbf16>
    %16 = vector.shape_cast %15 : vector<16x16x4xbf16> to vector<256x4xbf16>
    %17 = vector.extract_strided_slice %6 {offsets = [2, 4, 0], sizes = [16, 16, 4], strides = [1, 1, 1]} : vector<20x20x4xbf16> to vector<16x16x4xbf16>
    %18 = vector.shape_cast %17 : vector<16x16x4xbf16> to vector<256x4xbf16>
    %19 = vector.extract_strided_slice %6 {offsets = [4, 0, 0], sizes = [16, 16, 4], strides = [1, 1, 1]} : vector<20x20x4xbf16> to vector<16x16x4xbf16>
    %20 = vector.shape_cast %19 : vector<16x16x4xbf16> to vector<256x4xbf16>
    %21 = vector.extract_strided_slice %6 {offsets = [4, 2, 0], sizes = [16, 16, 4], strides = [1, 1, 1]} : vector<20x20x4xbf16> to vector<16x16x4xbf16>
    %22 = vector.shape_cast %21 : vector<16x16x4xbf16> to vector<256x4xbf16>
    %23 = vector.extract_strided_slice %6 {offsets = [4, 4, 0], sizes = [16, 16, 4], strides = [1, 1, 1]} : vector<20x20x4xbf16> to vector<16x16x4xbf16>
    %24 = vector.shape_cast %23 : vector<16x16x4xbf16> to vector<256x4xbf16>
    %25 = tpu.concatenate %8, %10, %12, %14, %16, %18, %20, %22, %24 in 1 : vector<256x4xbf16>, vector<256x4xbf16>, vector<256x4xbf16>, vector<256x4xbf16>, vector<256x4xbf16>, vector<256x4xbf16>, vector<256x4xbf16>, vector<256x4xbf16>, vector<256x4xbf16> -> vector<256x36xbf16>
    %c0_5 = arith.constant 0 : index
    %c0_6 = arith.constant 0 : index
    %26 = vector.load %arg4[%c0_5, %c0_6] : memref<36x128xbf16, #tpu.memory_space<vmem>>, vector<36x128xbf16>
    %cst_7 = arith.constant dense<0.000000e+00> : vector<256x128xf32>
    %27 = tpu.matmul %25, %26, %cst_7 {dimension_numbers = #tpu.dot_dimension_numbers<[1], [0], [0], [1], [0, 0, 1, 1], [], []>} : vector<256x36xbf16>, vector<36x128xbf16>, vector<256x128xf32> -> vector<256x128xf32>
    %c0_8 = arith.constant 0 : index
    %c0_9 = arith.constant 0 : index
    %28 = vector.load %arg7[%c0_8, %c0_9] : memref<1x128xf32, #tpu.memory_space<vmem>>, vector<1x128xf32>
    %29 = vector.shape_cast %28 : vector<1x128xf32> to vector<128xf32>
    %30 = vector.shape_cast %29 : vector<128xf32> to vector<1x128xf32>
    %31 = vector.broadcast %30 : vector<1x128xf32> to vector<256x128xf32>
    %32 = arith.addf %27, %31 : vector<256x128xf32>
    %c0_10 = arith.constant 0 : index
    %c0_11 = arith.constant 0 : index
    %c0_12 = arith.constant 0 : index
    %c0_13 = arith.constant 0 : index
    %33 = vector.load %arg2[%c0_10, %c0_11, %c0_12, %c0_13] : memref<1x16x16x6xbf16, #tpu.memory_space<vmem>>, vector<1x16x16x6xbf16>
    %34 = vector.shape_cast %33 : vector<1x16x16x6xbf16> to vector<16x16x6xbf16>
    %35 = vector.shape_cast %34 : vector<16x16x6xbf16> to vector<256x6xbf16>
    %c0_14 = arith.constant 0 : index
    %c0_15 = arith.constant 0 : index
    %36 = vector.load %arg5[%c0_14, %c0_15] : memref<6x128xbf16, #tpu.memory_space<vmem>>, vector<6x128xbf16>
    %cst_16 = arith.constant dense<0.000000e+00> : vector<256x128xf32>
    %37 = tpu.matmul %35, %36, %cst_16 {dimension_numbers = #tpu.dot_dimension_numbers<[1], [0], [0], [1], [0, 0, 1, 1], [], []>} : vector<256x6xbf16>, vector<6x128xbf16>, vector<256x128xf32> -> vector<256x128xf32>
    %c0_17 = arith.constant 0 : index
    %c0_18 = arith.constant 0 : index
    %38 = vector.load %arg8[%c0_17, %c0_18] : memref<1x128xf32, #tpu.memory_space<vmem>>, vector<1x128xf32>
    %39 = vector.shape_cast %38 : vector<1x128xf32> to vector<128xf32>
    %40 = vector.shape_cast %39 : vector<128xf32> to vector<1x128xf32>
    %41 = vector.broadcast %40 : vector<1x128xf32> to vector<256x128xf32>
    %42 = arith.addf %37, %41 : vector<256x128xf32>
    %43 = arith.addf %32, %42 : vector<256x128xf32>
    %cst_19 = arith.constant 0.000000e+00 : f32
    %44 = vector.broadcast %cst_19 : f32 to vector<256x128xf32>
    %45 = arith.maximumf %43, %44 : vector<256x128xf32>
    %46 = vector.shape_cast %45 : vector<256x128xf32> to vector<16x16x128xf32>
    %c0_20 = arith.constant 0 : index
    %c0_21 = arith.constant 0 : index
    %c0_22 = arith.constant 0 : index
    %c0_23 = arith.constant 0 : index
    %47 = vector.load %arg9[%c0_20, %c0_21, %c0_22, %c0_23] : memref<1x16x16x128xf32, #tpu.memory_space<vmem>>, vector<1x16x16x128xf32>
    %48 = vector.shape_cast %47 : vector<1x16x16x128xf32> to vector<16x16x128xf32>
    %49 = vector.shape_cast %46 : vector<16x16x128xf32> to vector<1x16x16x128xf32>
    tpu.vector_store %arg9[%c0_20, %c0_21, %c0_22, %c0_23], %49 {strides = array<i32>} : memref<1x16x16x128xf32, #tpu.memory_space<vmem>>, vector<1x16x16x128xf32>,
    %50 = arith.truncf %32 : vector<256x128xf32> to vector<256x128xbf16>
    %c0_24 = arith.constant 0 : index
    %c0_25 = arith.constant 0 : index
    %51 = vector.load %arg6[%c0_24, %c0_25] : memref<128x128xbf16, #tpu.memory_space<vmem>>, vector<128x128xbf16>
    %cst_26 = arith.constant dense<0.000000e+00> : vector<256x128xf32>
    %52 = tpu.matmul %50, %51, %cst_26 {dimension_numbers = #tpu.dot_dimension_numbers<[1], [0], [0], [1], [0, 0, 1, 1], [], []>} : vector<256x128xbf16>, vector<128x128xbf16>, vector<256x128xf32> -> vector<256x128xf32>
    %53 = vector.shape_cast %52 : vector<256x128xf32> to vector<16x16x128xf32>
    %c0_27 = arith.constant 0 : index
    %c0_28 = arith.constant 0 : index
    %c0_29 = arith.constant 0 : index
    %c0_30 = arith.constant 0 : index
    %54 = vector.load %arg10[%c0_27, %c0_28, %c0_29, %c0_30] : memref<1x16x16x128xf32, #tpu.memory_space<vmem>>, vector<1x16x16x128xf32>
    %55 = vector.shape_cast %54 : vector<1x16x16x128xf32> to vector<16x16x128xf32>
    %56 = vector.shape_cast %53 : vector<16x16x128xf32> to vector<1x16x16x128xf32>
    tpu.vector_store %arg10[%c0_27, %c0_28, %c0_29, %c0_30], %56 {strides = array<i32>} : memref<1x16x16x128xf32, #tpu.memory_space<vmem>>, vector<1x16x16x128xf32>,
    return
  }
  func.func @transform_0(%arg0: i32) -> (i32, i32, i32, i32) {
    %c0_i32 = arith.constant 0 : i32
    %c0_i32_0 = arith.constant 0 : i32
    %c0_i32_1 = arith.constant 0 : i32
    %c0_i32_2 = arith.constant 0 : i32
    return %arg0, %c0_i32, %c0_i32_0, %c0_i32_1 : i32, i32, i32, i32
  }
  func.func @transform_1(%arg0: i32) -> (i32, i32, i32, i32) {
    %c0_i32 = arith.constant 0 : i32
    %c0_i32_0 = arith.constant 0 : i32
    %c0_i32_1 = arith.constant 0 : i32
    %c0_i32_2 = arith.constant 0 : i32
    return %arg0, %c0_i32, %c0_i32_0, %c0_i32_1 : i32, i32, i32, i32
  }
  func.func @transform_2(%arg0: i32) -> (i32, i32) {
    %c0_i32 = arith.constant 0 : i32
    %c0_i32_0 = arith.constant 0 : i32
    %c0_i32_1 = arith.constant 0 : i32
    return %c0_i32, %c0_i32_0 : i32, i32
  }
  func.func @transform_3(%arg0: i32) -> (i32, i32) {
    %c0_i32 = arith.constant 0 : i32
    %c0_i32_0 = arith.constant 0 : i32
    %c0_i32_1 = arith.constant 0 : i32
    return %c0_i32, %c0_i32_0 : i32, i32
  }
  func.func @transform_4(%arg0: i32) -> (i32, i32) {
    %c0_i32 = arith.constant 0 : i32
    %c0_i32_0 = arith.constant 0 : i32
    %c0_i32_1 = arith.constant 0 : i32
    return %c0_i32, %c0_i32_0 : i32, i32
  }
  func.func @transform_5(%arg0: i32) -> (i32, i32) {
    %c0_i32 = arith.constant 0 : i32
    %c0_i32_0 = arith.constant 0 : i32
    %c0_i32_1 = arith.constant 0 : i32
    return %c0_i32, %c0_i32_0 : i32, i32
  }
  func.func @transform_6(%arg0: i32) -> (i32, i32) {
    %c0_i32 = arith.constant 0 : i32
    %c0_i32_0 = arith.constant 0 : i32
    %c0_i32_1 = arith.constant 0 : i32
    return %c0_i32, %c0_i32_0 : i32, i32
  }
  func.func @transform_7(%arg0: i32) -> (i32, i32) {
    %c0_i32 = arith.constant 0 : i32
    %c0_i32_0 = arith.constant 0 : i32
    %c0_i32_1 = arith.constant 0 : i32
    return %c0_i32, %c0_i32_0 : i32, i32
  }
  func.func @transform_8(%arg0: i32) -> (i32, i32, i32, i32) {
    %c0_i32 = arith.constant 0 : i32
    %c0_i32_0 = arith.constant 0 : i32
    %c0_i32_1 = arith.constant 0 : i32
    %c0_i32_2 = arith.constant 0 : i32
    return %arg0, %c0_i32, %c0_i32_0, %c0_i32_1 : i32, i32, i32, i32
  }
  func.func @transform_9(%arg0: i32) -> (i32, i32, i32, i32) {
    %c0_i32 = arith.constant 0 : i32
    %c0_i32_0 = arith.constant 0 : i32
    %c0_i32_1 = arith.constant 0 : i32
    %c0_i32_2 = arith.constant 0 : i32
    return %arg0, %c0_i32, %c0_i32_0, %c0_i32_1 : i32, i32, i32, i32
  }
}

</mosaic_0001>

<bundles_post_ra>
// kernel: tpu_custom_call.1
= control target key start
LH: loop header
LB: loop body
LE: loop exit
PB: predicated region body
PF: predicated region fallthrough
CT: control target
= control target key end

     0   :  { %s5526_s0 = inlined_call_operand.vmem [shape: bf16[2,8,20,4], index: 0, kind: input, shape index: {}]   ;;  %s5527_s1 = inlined_call_operand.vmem [shape: bf16[2,16,16,6], index: 1, kind: input, shape index: {}]   ;;  %s5528_s2 = inlined_call_operand.vmem [shape: bf16[20,8], index: 2, kind: input, shape index: {}]   ;;  %s5529_s3 = inlined_call_operand.vmem [shape: bf16[36,128], index: 3, kind: input, shape index: {}]   ;;  %s5530_s4 = inlined_call_operand.vmem [shape: bf16[6,128], index: 4, kind: input, shape index: {}]   ;;  %s5531_s5 = inlined_call_operand.vmem [shape: bf16[128,128], index: 5, kind: input, shape index: {}]   ;;  %s5532_s6 = inlined_call_operand.vmem [shape: f32[1,128], index: 6, kind: input, shape index: {}]   ;;  %s5533_s7 = inlined_call_operand.vmem [shape: f32[1,128], index: 7, kind: input, shape index: {}]   ;;  %s5534_s8 = inlined_call_operand.hbm [shape: f32[2,16,16,128], index: 8, kind: output, shape index: {0}]   ;;  %s5535_s9 = inlined_call_operand.hbm [shape: f32[2,16,16,128], index: 9, kind: output, shape index: {1}]  }
   0x1   :  { %5577 = sst [smem:[#allocation30_spill]] %s5526_s0 }
   0x2   :  { %5578 = sst [smem:[#allocation31_spill]] %s5527_s1 }
   0x3   :  { %5579 = sst [smem:[#allocation32_spill]] %s5528_s2 }
   0x4   :  { %15 = vsyncpa [#allocation3], 0 }
   0x5   :  { %17 = vsyncpa [#allocation3 + $0x1], 0 }
   0x6   :  { %18 = vsyncpa [#allocation5], 0 }
   0x7   :  { %20 = vsyncpa [#allocation5 + $0x1], 0  ;;  %s3916_s30 = smov 0   ;;  %s3918_s10 = smov 0  }
   0x8   :  { %s3920_s11 = smov 0   ;;  %s3922_s12 = smov 0  }
   0x9 LB: > { %5580 = sst [smem:[#allocation8_spill]] %s3823_s11  ;;  %s3937_s13 = sadd.s32 4294967295, %s3827_s12   ;;  %s3827_s12 = sphi %s3922_s12, %s5687_s12   ;;  %s3823_s11 = sphi %s3920_s11, %s5689_s11   ;;  %s3819_s10 = sphi %s3918_s10, %s5691_s10   ;;  %s3815_s30 = sphi %s3916_s30, %s5690_s30  }
   0xa   : > { %s3313_s14 = sadd.s32 4294967294, %s3827_s12   ;;  %s3941_s15 = sadd.s32 1, %s3827_s12  }
   0xb   : > { %5581 = sst [smem:[#allocation9_spill]] %s3941_s15  ;;  %s211_s16 = sadd.s32 1, %s3823_s11 }
   0xc   : > { %s208_s17 = ssub.s32 %s3827_s12, %s3941_s15  ;;  %p221_p0 = scmp.ne.s32.totalorder %s3823_s11, %s3819_s10 }
   0xd   : > { %p209_p1 = scmp.eq.s32.totalorder %s208_s17, 0  ;;  %p222_p2 = scmp.eq.s32.totalorder %s3937_s13, 1 }
   0xe   : > { %p227_p3 = scmp.ne.s32.totalorder %s3819_s10, %s3815_s30  ;;  %p228_p4 = scmp.eq.s32.totalorder %s3313_s14, 1 }
   0xf   : > { %s3952_s18 = scalar_select %p209_p1, %s3823_s11, %s211_s16  }
  0x10   : > { %p3954_p5 = por %p222_p2, %p221_p0  ;;  %p3958_p6 = por %p228_p4, %p227_p3 }
  0x11   : > { %5582 = sst [smem:[#allocation10_spill]] %s3952_s18  ;;  %p3316_p7 = scmp.ge.s32.totalorder %s3827_s12, 1 }
  0x12   : > { %p306_p8 = scmp.lt.s32.totalorder %s3827_s12, 3 }
  0x14   : > { %p307_p9 = pnand %p3316_p7, %p306_p8 }
  0x16   : > { %310 = sbr.rel (%p307_p9) target bundleno = 1427 (0x593), region = 52 }
  0x1d   : > { %p352_p10 = scmp.lt.s32.totalorder %s3937_s13, 1  ;;  %v391_v0 = vlaneseq  ;;  %v3829_v1 = vmov 1983009808   ;;  %v3830_v5 = vmov 1934713408   ;;  %s5585_s1 = sld [smem:[#allocation31_spill]] }
  0x1e   : > { %v389_v2 = vunpack.c.l.s4 %v3829_v1  ;;  %v406_v6 = vunpack.c.l.s4 %v3830_v5  ;;  %s5586_s0 = sld [smem:[#allocation30_spill]]  ;;  %v3831_v37 = vmov 0   ;;  %s5540_s14 = smov 16   ;;  %vm713_vm0 = vcmask 64512  }
  0x1f   : > { %s353_s21 = scalar_select %p352_p10, %s3937_s13, 1  ;;  %v392_v4 = vshrl.u32 %v391_v0, 7  ;;  %vm709_vm1 = vcmask 31744   ;;  %vm716_vm2 = vcmask 97280   ;;  %vm719_vm3 = vcmask 130048  }
  0x20   : > { %v390_v3 = vunpack.c.0.s8 %v389_v2  ;;  %v407_v8 = vunpack.c.0.s8 %v406_v6  ;;  %s5544_s16 = smov 4   ;;  %s5536_s17 = smov 32   ;;  %vm722_vm4 = vcmask 162816   ;;  %vm725_vm5 = vcmask 195584  }
  0x21   : > { %s3612_s22 = smul.u32 96, %s353_s21  ;;  %s3414_s23 = sshll.u32 %s353_s21, 7  ;;  %vm5546_vm6 = vcmask 228352   ;;  %vm5548_vm7 = vcmask 261120   ;;  %vm5547_vm8 = vcmask 293888   ;;  %vm737_vm9 = vcmask 326656  }
  0x22   : > { %v3976_v7 = vsub.s32 %v390_v3, %v392_v4  ;;  %v3984_v15 = vsub.s32 %v407_v8, %v392_v4  ;;  %s5542_s21 = smov 8   ;;  %s3838_s24 = smov 40   ;;  %vm740_vm10 = vcmask 359424   ;;  %vm743_vm11 = vcmask 392192  }
  0x23   : > { %s3969_s26 = scalar_lea.vmem %s5585_s1, %s3414_s23  ;;  %s5538_s23 = smov 20   ;;  %vm746_vm12 = vcmask 424960   ;;  %vm749_vm13 = vcmask 457728   ;;  %vm752_vm14 = vcmask 490496   ;;  %vm755_vm15 = vcmask 523264  }
  0x24   : > { %s3974_s29 = scalar_lea.vmem %s5586_s0, %s3612_s22  ;;  %s5553_s22 = smov 24  }
  0x25   : > { %v3692_v9 = vld [vmem:[%s3974_s29] ss:$48 sps:$4 sm:$0xff]   ;;  %v3693_v10 = vld [vmem:[%s3974_s29 + $0x18] ss:$48 sps:$4 sm:$0xff]   ;;  %v3694_v11 = vld [vmem:[%s3974_s29 + $0xc] ss:$48 sps:$4 sm:$0xff]  }
  0x26   : > { %v3695_v12 = vld [vmem:[%s3974_s29 + $0x24] ss:$48 sps:$4 sm:$0xff]   ;;  %v394_v13 = vrot.slane %v3692_v9, %v3976_v7  ;;  %v402_v14 = vrot.slane %v3693_v10, %v3976_v7  ;;  %v428_v16 = vrot.slane %v3694_v11, %v3976_v7  ;;  %v3697_v23 = vld [vmem:[%s3974_s29 + $0x1c] ss:$48 sps:$4 sm:$0xff]   ;;  %v3698_v24 = vld [vmem:[%s3974_s29 + $0x10] ss:$48 sps:$4 sm:$0xff]  }
  0x27   : > { %v436_v17 = vrot.slane %v3695_v12, %v3976_v7  ;;  %v3696_v18 = vld [vmem:[%s3974_s29 + $0x4] ss:$48 sps:$4 sm:$0xff]   ;;  %v3699_v25 = vld [vmem:[%s3974_s29 + $0x28] ss:$48 sps:$4 sm:$0xff]   ;;  %v470_v31 = vrot.slane %v3697_v23, %v3976_v7  ;;  %v496_v32 = vrot.slane %v3698_v24, %v3976_v7  ;;  %s3839_s25 = smov 36   ;;  %s5551_s27 = smov 12  }
  0x28   : > { %v404_v19 = vcombine.high %v394_v13, %v402_v14  ;;  %v403_v21 = vcombine.low %v394_v13, %v402_v14  ;;  %v462_v26 = vrot.slane %v3696_v18, %v3976_v7  ;;  %v504_v33 = vrot.slane %v3699_v25, %v3976_v7  ;;  %v3700_v60 = vld [vmem:[%s3974_s29 + $0x8] ss:$48 sps:$4 sm:$0x33]   ;;  %v3701_v63 = vld [vmem:[%s3974_s29 + $0x20] ss:$48 sps:$4 sm:$0x33]  }
  0x29   : > { %v438_v20 = vcombine.high %v428_v16, %v436_v17  ;;  %v437_v22 = vcombine.low %v428_v16, %v436_v17  ;;  %v3702_v0 = vld [vmem:[%s3974_s29 + $0x14] ss:$48 sps:$4 sm:$0x33]   ;;  %v3703_v8 = vld [vmem:[%s3974_s29 + $0x2c] ss:$48 sps:$4 sm:$0x33]   ;;  %v530_v17 = vrot.slane %v3700_v60, %v3976_v7 }
  0x2a   : > { %v418_v27 = vrot.slane %v404_v19, %v3984_v15  ;;  %v3996_v29 = vrot.slane %v403_v21, %v3984_v15  ;;  %v471_v39 = vcombine.low %v462_v26, %v470_v31  ;;  %v505_v40 = vcombine.low %v496_v32, %v504_v33  ;;  %s5555_s28 = smov 52   ;;  %s3842_s29 = smov 48  }
  0x2b   : > { %v452_v28 = vrot.slane %v438_v20, %v3984_v15  ;;  %v3999_v30 = vrot.slane %v437_v22, %v3984_v15  ;;  %v472_v62 = vcombine.high %v462_v26, %v470_v31  ;;  %v506_v3 = vcombine.high %v496_v32, %v504_v33  ;;  %s5587_s2 = sld [smem:[#allocation32_spill]]  ;;  %s5588_s0 = smov 64  }
  0x2c   : > { %v576_v35 = vshrl.u32 %v3996_v29, 16  ;;  %v419_v38 = vcombine.high %v3996_v29, %v3831_v37  ;;  %v4011_v42 = vcombine.high %v418_v27, %v3831_v37  ;;  %v588_v46 = vshrl.u32 %v418_v27, 16  ;;  %s5589_s1 = smov 68   ;;  %s5591_s18 = smov 60  }
  0x2d   : > { %v587_v34 = vpack.i.b16 %v452_v28, %v418_v27  ;;  %v577_v36 = vshrl.u32 %v3999_v30, 16  ;;  %v453_v41 = vcombine.high %v3999_v30, %v3831_v37  ;;  %v4014_v45 = vcombine.high %v452_v28, %v3831_v37  ;;  %s5592_s11 = smov 52   ;;  %s5593_s15 = smov 124  }
  0x2e   : > { %v479_v47 = vrot.slane %v471_v39, %v3984_v15  ;;  %v513_v48 = vrot.slane %v505_v40, %v3984_v15  ;;  %v589_v50 = vshrl.u32 %v452_v28, 16  ;;  %v582_v1 = vshrl.u32 %v419_v38, 16 }
  0x2f   : > { %v3325_v43 = vcombine.low %v587_v34, %v587_v34  ;;  %v578_v44 = vpack.i.b16 %v577_v36, %v576_v35  ;;  %v581_v49 = vpack.i.b16 %v453_v41, %v419_v38  ;;  %v593_v54 = vpack.i.b16 %v4014_v45, %v4011_v42 }
  0x30   : > { %v599_v52 = vpack.i.b16 %v513_v48, %v479_v47  ;;  %v4022_v55 = vcombine.high %v479_v47, %v3831_v37  ;;  %v590_v56 = vpack.i.b16 %v589_v50, %v588_v46  ;;  %v4026_v57 = vcombine.high %v513_v48, %v3831_v37 }
  0x31   : > { %647 = vrot.lane.b32.xlu1 %v3325_v43, %s5540_s14  ;;  %v3322_v51 = vcombine.low %v578_v44, %v578_v44  ;;  %v3323_v53 = vcombine.low %v581_v49, %v581_v49  ;;  %v600_v58 = vshrl.u32 %v479_v47, 16  ;;  %v601_v59 = vshrl.u32 %v513_v48, 16  ;;  %s5566_s14 = smov 64  }
  0x32   : > { %v3329_v61 = vcombine.low %v599_v52, %v599_v52  ;;  %v583_v2 = vshrl.u32 %v453_v41, 16  ;;  %v3327_v4 = vcombine.low %v593_v54, %v593_v54  ;;  %v605_v5 = vpack.i.b16 %v4026_v57, %v4022_v55 }
  0x33   : > { %635 = vrot.lane.b32.xlu0 %v3322_v51, %s5544_s16  ;;  %v486_v6 = vrot.slane %v472_v62, %v3984_v15  ;;  %v3326_v9 = vcombine.low %v590_v56, %v590_v56  ;;  %v602_v10 = vpack.i.b16 %v601_v59, %v600_v58  ;;  %v520_v11 = vrot.slane %v506_v3, %v3984_v15  ;;  %s5563_s16 = smov 68  }
  0x34   : > { %v584_v13 = vpack.i.b16 %v583_v2, %v582_v1  ;;  %v594_v16 = vshrl.u32 %v4011_v42, 16  ;;  %v3331_v18 = vcombine.low %v605_v5, %v605_v5  ;;  %v595_v19 = vshrl.u32 %v4014_v45, 16 }
  0x35   : > { %663 = vrot.lane.b32.xlu1 %v3329_v61, %s5536_s17  ;;  %v612_v12 = vshrl.u32 %v486_v6, 16  ;;  %v613_v14 = vshrl.u32 %v520_v11, 16  ;;  %v538_v20 = vrot.slane %v3701_v63, %v3976_v7  ;;  %v555_v21 = vrot.slane %v3702_v0, %v3976_v7  ;;  %s3845_s17 = smov 44   ;;  %v3704_v61 = vld [vmem:[%s5587_s2] sm:$0xff]  }
  0x36   : > { %v3330_v22 = vcombine.low %v602_v10, %v602_v10  ;;  %v563_v24 = vrot.slane %v3703_v8, %v3976_v7  ;;  %v488_v25 = vcombine.high %v486_v6, %v3831_v37  ;;  %v522_v26 = vcombine.high %v520_v11, %v3831_v37  ;;  %3482 = vmatprep.mubr.msk.bf16.mxu0 %vm713_vm0, %v3704_v61 }
  0x37   : > { %639 = vrot.lane.b32.xlu0 %v3323_v53, %s5542_s21  ;;  %v614_v23 = vpack.i.b16 %v613_v14, %v612_v12  ;;  %v539_v27 = vcombine.low %v530_v17, %v538_v20  ;;  %v575_v28 = vpack.i.b16 %v3999_v30, %v3996_v29  ;;  %v3324_v31 = vcombine.low %v584_v13, %v584_v13  ;;  %s5557_s21 = smov 60  }
  0x38   : > { %v611_v32 = vpack.i.b16 %v520_v11, %v486_v6  ;;  %v564_v33 = vcombine.low %v555_v21, %v563_v24  ;;  %v596_v35 = vpack.i.b16 %v595_v19, %v594_v16  ;;  %v606_v36 = vshrl.u32 %v4022_v55, 16 }
  0x39   : > { %655 = vrot.lane.b32.xlu1 %v3327_v4, %s5553_s22  ;;  %v3334_v34 = vcombine.low %v614_v23, %v614_v23  ;;  %v607_v38 = vshrl.u32 %v4026_v57, 16  ;;  %v617_v39 = vpack.i.b16 %v522_v26, %v488_v25  ;;  %v546_v40 = vrot.slane %v539_v27, %v3984_v15  ;;  %s5560_s22 = smov 124  }
  0x3a   : > { %v3333_v41 = vcombine.low %v611_v32, %v611_v32  ;;  %v571_v42 = vrot.slane %v564_v33, %v3984_v15  ;;  %v3328_v43 = vcombine.low %v596_v35, %v596_v35  ;;  %v618_v45 = vshrl.u32 %v488_v25, 16 }
  0x3b   : > { %651 = vrot.lane.b32.xlu0 %v3326_v9, %s5538_s23  ;;  %v608_v44 = vpack.i.b16 %v607_v38, %v606_v36  ;;  %v619_v46 = vshrl.u32 %v522_v26, 16  ;;  %v3335_v47 = vcombine.low %v617_v39, %v617_v39  ;;  %v624_v48 = vshrl.u32 %v546_v40, 16  ;;  %s5572_s23 = smov 76  }
  0x3c   : > { %v623_v49 = vpack.i.b16 %v571_v42, %v546_v40  ;;  %v625_v50 = vshrl.u32 %v571_v42, 16  ;;  %v547_v51 = vcombine.high %v546_v40, %v3831_v37  ;;  %v572_v52 = vcombine.high %v571_v42, %v3831_v37 }
  0x3d   : > { %671 = vrot.lane.b32.xlu1 %v3331_v18, %s3838_s24  ;;  %s5549_s24 = smov 28   ;;  %v3332_v53 = vcombine.low %v608_v44, %v608_v44  ;;  %v620_v54 = vpack.i.b16 %v619_v46, %v618_v45  ;;  %v3705_v44 = vld [vmem:[%s5587_s2 + $0x8] ss:$0 sps:$4 sm:$0x33]   ;;  %s5590_s2 = smov 56  }
  0x3e   : > { %v3337_v55 = vcombine.low %v623_v49, %v623_v49  ;;  %v629_v56 = vpack.i.b16 %v572_v52, %v547_v51  ;;  %v626_v58 = vpack.i.b16 %v625_v50, %v624_v48  ;;  %v630_v59 = vshrl.u32 %v547_v51, 16 }
  0x3f   : > { %667 = vrot.lane.b32.xlu0 %v3330_v22, %s3839_s25  ;;  %s5561_s25 = smov 56   ;;  %v3336_v57 = vcombine.low %v620_v54, %v620_v54  ;;  %v631_v60 = vshrl.u32 %v572_v52, 16 }
  0x40   : > { %v3339_v62 = vcombine.low %v629_v56, %v629_v56  ;;  %v3338_v63 = vcombine.low %v626_v58, %v626_v58 }
  0x41   : > { %643 = vrot.lane.b32.xlu1 %v3324_v31, %s5551_s27  ;;  %v632_v0 = vpack.i.b16 %v631_v60, %v630_v59  ;;  %s5559_s27 = smov 120  }
  0x43   : > { %683 = vrot.lane.b32.xlu0 %v3334_v34, %s5555_s28  ;;  %v3340_v1 = vcombine.low %v632_v0, %v632_v0  ;;  %s3855_s28 = smov 104  }
  0x45   : > { %679 = vrot.lane.b32.xlu1 %v3333_v41, %s3842_s29  ;;  %s3854_s29 = smov 116  }
  0x47   : > { %659 = vrot.lane.b32.xlu0 %v3328_v43, %s5549_s24  ;;  %s5565_s24 = smov 112  }
  0x49   : > { %687 = vrot.lane.b32.xlu1 %v3335_v47, %s5561_s25  ;;  %s3859_s25 = smov 88  }
  0x4b   : > { %675 = vrot.lane.b32.xlu0 %v3332_v53, %s3845_s17  ;;  %s5571_s17 = smov 72  }
  0x4d   : > { %695 = vrot.lane.b32.xlu1 %v3337_v55, %s5566_s14  ;;  %s3862_s14 = smov 84  }
  0x4f   : > { %691 = vrot.lane.b32.xlu0 %v3336_v57, %s5557_s21  ;;  %s3856_s21 = smov 108  }
  0x51   : > { %703 = vrot.lane.b32.xlu1 %v3339_v62, %s5571_s17 }
  0x53   : > { %699 = vrot.lane.b32.xlu0 %v3338_v63, %s5563_s16  ;;  %s3860_s16 = smov 92  }
  0x57   : > { %707 = vrot.lane.b32.xlu0 %v3340_v1, %s5572_s23 }
  0xa3   : > { %v648_v2 = vpop.permute.xlu1 %647 }
  0xa5   : > { %v636_v3 = vpop.permute.xlu0 %635 }
  0xa6   : > { %v712_v11 = vsel %vm709_vm1, %v575_v28, %v636_v3 }
  0xa7   : > { %v664_v4 = vpop.permute.xlu1 %663 }
  0xa9   : > { %v640_v5 = vpop.permute.xlu0 %639 }
  0xaa   : > { %v715_v12 = vsel %vm713_vm0, %v712_v11, %v640_v5 }
  0xab   : > { %v656_v6 = vpop.permute.xlu1 %655 }
  0xad   : > { %v652_v8 = vpop.permute.xlu0 %651 }
  0xaf   : > { %v672_v9 = vpop.permute.xlu1 %671 }
  0xb1   : > { %v668_v10 = vpop.permute.xlu0 %667 }
  0xb3   : > { %v644_v13 = vpop.permute.xlu1 %643 }
  0xb4   : > { %v718_v14 = vsel %vm716_vm2, %v715_v12, %v644_v13 }
  0xb5   : > { %v684_v16 = vpop.permute.xlu0 %683  ;;  %v721_v17 = vsel %vm719_vm3, %v718_v14, %v648_v2 }
  0xb6   : > { %v724_v18 = vsel %vm722_vm4, %v721_v17, %v652_v8 }
  0xb7   : > { %v680_v19 = vpop.permute.xlu1 %679  ;;  %v727_v29 = vsel %vm725_vm5, %v724_v18, %v656_v6 }
  0xb9   : > { %v660_v30 = vpop.permute.xlu0 %659 }
  0xba   : > { %v730_v20 = vsel %vm5546_vm6, %v727_v29, %v660_v30  ;;  %vm758_vm6 = vcmask 556032  }
  0xbb   : > { %v733_v21 = vsel %vm5548_vm7, %v730_v20, %v664_v4  ;;  %v688_v23 = vpop.permute.xlu1 %687  ;;  %vm764_vm7 = vcmask 621568  }
  0xbc   : > { %v736_v22 = vsel %vm5547_vm8, %v733_v21, %v668_v10  ;;  %vm761_vm8 = vcmask 588800  }
  0xbd   : > { %v739_v24 = vsel %vm737_vm9, %v736_v22, %v672_v9  ;;  %v676_v25 = vpop.permute.xlu0 %675  ;;  %vm784_vm9 = vcmask 1043456  }
  0xbe   : > { %v742_v26 = vsel %vm740_vm10, %v739_v24, %v676_v25  ;;  %vm2638_vm10 = vcmask 1042432  }
  0xbf   : > { %v745_v27 = vsel %vm743_vm11, %v742_v26, %v680_v19  ;;  %v696_v31 = vpop.permute.xlu1 %695  ;;  %vm2589_vm11 = vcmask 48128  }
  0xc0   : > { %v748_v28 = vsel %vm746_vm12, %v745_v27, %v684_v16  ;;  %vm5625_vm12 = vcmask 228352  }
  0xc1   : > { %v751_v32 = vsel %vm749_vm13, %v748_v28, %v688_v23  ;;  %v692_v33 = vpop.permute.xlu0 %691  ;;  %vm5626_vm13 = vcmask 261120  }
  0xc2   : > { %v754_v34 = vsel %vm752_vm14, %v751_v32, %v692_v33  ;;  %vm5627_vm14 = vcmask 293888  }
  0xc3   : > { %v757_v35 = vsel %vm755_vm15, %v754_v34, %v696_v31  ;;  %v704_v39 = vpop.permute.xlu1 %703  ;;  %vm5628_vm15 = vmmov %vm5625_vm12 }
  0xc5   : > { %v700_v36 = vpop.permute.xlu0 %699 }
  0xc6   : > { %v760_v38 = vsel %vm758_vm6, %v757_v35, %v700_v36  ;;  %vm1595_vm6 = vcmask 1046528  }
  0xc7   : > { %v763_v40 = vsel %vm761_vm8, %v760_v38, %v704_v39  ;;  %vm2304_vm8 = vcmask 1041408  }
  0xc9   : > { %v708_v41 = vpop.permute.xlu0 %707 }
  0xca   : > { %v766_v42 = vsel %vm764_vm7, %v763_v40, %v708_v41  ;;  %vm1644_vm7 = vcmask 1045504  }
  0xcb   : > { %3608 = vmatprep.subr.msk.bf16.mxu0 %vm784_vm9, %v766_v42  ;;  %v785_v43 = vsel %vm784_vm9, %v766_v42, 0  ;;  %vm5629_vm9 = vmmov %vm5626_vm13 }
  0xcc   : > { %3481 = vmatpush3.bf16.msra.mxu0 %v785_v43 }
  0xcf   : > { %3483 = vmatmul.mubr.msk.bf16.vlgmr.msra.gmra.mrb[0].mxu0 %vm713_vm0, %v3705_v44 }
 0x1a2   : > { %v3484_v45 = vpop.f32.mrb[0].mxu0 }
 0x1a3   : > { %v4085_v46 = vpack.c.bf16 %v3484_v45, %v3484_v45  ;;  %v821_v47 = vpop.f32.mrb[1].mxu0 }
 0x1a4   : > { %v3485_v48 = vpop.f32.mrb[2].mxu0 }
 0x1a5   : > { %847 = vrot.lane.b32.xlu1 %v4085_v46, %s5559_s27  ;;  %841 = vrot.lane.b32.xlu0 %v4085_v46, %s5560_s22  ;;  %v824_v49 = vpop.f32.mrb[3].mxu0  ;;  %s3857_s27 = smov 96   ;;  %s3858_s22 = smov 100  }
 0x1a6   : > { %v4091_v50 = vpack.c.bf16 %v824_v49, %v821_v47 }
 0x1a9   : > { %859 = vrot.lane.b32.xlu1 %v4085_v46, %s5565_s24  ;;  %853 = vrot.lane.b32.xlu0 %v4085_v46, %s3854_s29  ;;  %s3861_s24 = smov 80  }
 0x1ad   : > { %871 = vrot.lane.b32.xlu1 %v4085_v46, %s3855_s28  ;;  %865 = vrot.lane.b32.xlu0 %v4085_v46, %s3856_s21 }
 0x1b1   : > { %883 = vrot.lane.b32.xlu1 %v4085_v46, %s3857_s27  ;;  %877 = vrot.lane.b32.xlu0 %v4085_v46, %s3858_s22 }
 0x1b5   : > { %895 = vrot.lane.b32.xlu1 %v4085_v46, %s3859_s25  ;;  %889 = vrot.lane.b32.xlu0 %v4085_v46, %s3860_s16 }
 0x1b9   : > { %907 = vrot.lane.b32.xlu1 %v4085_v46, %s3861_s24  ;;  %901 = vrot.lane.b32.xlu0 %v4085_v46, %s3862_s14 }
 0x1bd   : > { %919 = vrot.lane.b32.xlu1 %v4085_v46, %s5571_s17  ;;  %913 = vrot.lane.b32.xlu0 %v4085_v46, %s5572_s23  ;;  %s5594_s17 = smov 120   ;;  %s5595_s23 = smov 112  }
 0x1c1   : > { %931 = vrot.lane.b32.xlu1 %v4085_v46, %s5588_s0  ;;  %925 = vrot.lane.b32.xlu0 %v4085_v46, %s5589_s1 }
 0x1c5   : > { %941 = vrot.lane.b32.xlu1 %v4085_v46, %s5590_s2  ;;  %936 = vrot.lane.b32.xlu0 %v4085_v46, %s5591_s18 }
 0x1c9   : > { %946 = vrot.lane.b32.xlu0 %v4085_v46, %s5592_s11  ;;  %839 = vrot.lane.b32.xlu1 %v4091_v50, %s5593_s15  ;;  %s5596_s15 = smov 76  }
 0x1cd   : > { %845 = vrot.lane.b32.xlu0 %v4091_v50, %s5594_s17  ;;  %851 = vrot.lane.b32.xlu1 %v4091_v50, %s3854_s29  ;;  %s5597_s17 = smov 72  }
 0x1d1   : > { %857 = vrot.lane.b32.xlu0 %v4091_v50, %s5595_s23  ;;  %863 = vrot.lane.b32.xlu1 %v4091_v50, %s3856_s21  ;;  %s5609_s21 = smov 32  }
 0x1d5   : > { %869 = vrot.lane.b32.xlu0 %v4091_v50, %s3855_s28  ;;  %875 = vrot.lane.b32.xlu1 %v4091_v50, %s3858_s22 }
 0x1d9   : > { %881 = vrot.lane.b32.xlu0 %v4091_v50, %s3857_s27  ;;  %887 = vrot.lane.b32.xlu1 %v4091_v50, %s3860_s16  ;;  %s5608_s16 = smov 20  }
 0x1dd   : > { %893 = vrot.lane.b32.xlu0 %v4091_v50, %s3859_s25  ;;  %899 = vrot.lane.b32.xlu1 %v4091_v50, %s3862_s14  ;;  %s5607_s14 = smov 16  }
 0x1e1   : > { %905 = vrot.lane.b32.xlu0 %v4091_v50, %s3861_s24  ;;  %911 = vrot.lane.b32.xlu1 %v4091_v50, %s5596_s15  ;;  %s3863_s24 = smov [#allocation2]  }
 0x1e2   : > { %s3737_s29 = sshll.u32 %s3863_s24, 4  ;;  %s3738_s29 = int_to_ptr.vmem [resolvable:$false] %s3737_s29 }
 0x1e3   : > { %s3739_s15 = scalar_lea.vmem %s3738_s29, 8192 }
 0x1e5   : > { %917 = vrot.lane.b32.xlu0 %v4091_v50, %s5597_s17  ;;  %923 = vrot.lane.b32.xlu1 %v4091_v50, %s5589_s1  ;;  %s5599_s1 = smov 12  }
 0x1e9   : > { %929 = vrot.lane.b32.xlu0 %v4091_v50, %s5588_s0  ;;  %934 = vrot.lane.b32.xlu1 %v4091_v50, %s5591_s18  ;;  %s5598_s0 = smov 24   ;;  %s5606_s18 = smov 8  }
 0x1ed   : > { %939 = vrot.lane.b32.xlu0 %v4091_v50, %s5590_s2  ;;  %944 = vrot.lane.b32.xlu1 %v4091_v50, %s5592_s11  ;;  %s5604_s2 = smov 28   ;;  %s5605_s11 = smov 4  }
 0x217   : > { %v848_v51 = vpop.permute.xlu1 %847  ;;  %v842_v52 = vpop.permute.xlu0 %841 }
 0x21b   : > { %v860_v53 = vpop.permute.xlu1 %859  ;;  %v854_v54 = vpop.permute.xlu0 %853 }
 0x21c   : > { %v1353_v62 = vcombine.low %v4085_v46, %v860_v53 }
 0x21e   : > { %v1360_v4 = vrot.slane %v1353_v62, %v3976_v7 }
 0x21f   : > { %v872_v55 = vpop.permute.xlu1 %871  ;;  %v866_v56 = vpop.permute.xlu0 %865 }
 0x220   : > { %v1361_v61 = vcombine.low %v848_v51, %v872_v55  ;;  %v1403_v8 = vcombine.low %v842_v52, %v866_v56 }
 0x222   : > { %v1368_v1 = vrot.slane %v1361_v61, %v3976_v7  ;;  %v1410_v18 = vrot.slane %v1403_v8, %v3976_v7 }
 0x223   : > { %v884_v57 = vpop.permute.xlu1 %883  ;;  %v878_v58 = vpop.permute.xlu0 %877 }
 0x224   : > { %v1411_v2 = vcombine.low %v854_v54, %v878_v58  ;;  %v1385_v10 = vcombine.low %v1360_v4, %v1368_v1 }
 0x226   : > { %v1418_v11 = vrot.slane %v1411_v2, %v3976_v7  ;;  %v1392_v30 = vrot.slane %v1385_v10, %v3984_v15 }
 0x227   : > { %v896_v59 = vpop.permute.xlu1 %895  ;;  %v890_v60 = vpop.permute.xlu0 %889 }
 0x228   : > { %v1435_v20 = vcombine.low %v1410_v18, %v1418_v11 }
 0x22a   : > { %v1442_v31 = vrot.slane %v1435_v20, %v3984_v15 }
 0x22b   : > { %v908_v63 = vpop.permute.xlu1 %907  ;;  %v902_v0 = vpop.permute.xlu0 %901 }
 0x22c   : > { %v1369_v3 = vcombine.low %v884_v57, %v908_v63 }
 0x22e   : > { %v1376_v12 = vrot.slane %v1369_v3, %v3976_v7 }
 0x22f   : > { %v920_v5 = vpop.permute.xlu1 %919  ;;  %v914_v6 = vpop.permute.xlu0 %913 }
 0x230   : > { %v1377_v9 = vcombine.low %v896_v59, %v920_v5  ;;  %v1419_v14 = vcombine.low %v890_v60, %v914_v6 }
 0x232   : > { %v1384_v13 = vrot.slane %v1377_v9, %v3976_v7  ;;  %v1426_v22 = vrot.slane %v1419_v14, %v3976_v7 }
 0x233   : > { %v932_v16 = vpop.permute.xlu1 %931  ;;  %v926_v17 = vpop.permute.xlu0 %925 }
 0x234   : > { %v1393_v19 = vcombine.low %v1376_v12, %v1384_v13  ;;  %v1427_v29 = vcombine.low %v902_v0, %v926_v17 }
 0x236   : > { %v1400_v21 = vrot.slane %v1393_v19, %v3984_v15  ;;  %v1434_v23 = vrot.slane %v1427_v29, %v3976_v7 }
 0x237   : > { %v942_v24 = vpop.permute.xlu1 %941  ;;  %v937_v25 = vpop.permute.xlu0 %936 }
 0x238   : > { %v1402_v26 = vcombine.high %v1392_v30, %v1400_v21  ;;  %v1443_v27 = vcombine.low %v1426_v22, %v1434_v23  ;;  %v1455_v28 = vcombine.low %v932_v16, %v942_v24  ;;  %v1401_v35 = vcombine.low %v1392_v30, %v1400_v21 }
 0x23a   : > { %v1450_v32 = vrot.slane %v1443_v27, %v3984_v15  ;;  %v4163_v39 = vrot.slane %v1455_v28, %v3984_v15  ;;  %v1532_v42 = vshrl.u32 %v1402_v26, 16  ;;  %v1526_v48 = vshrl.u32 %v1401_v35, 16 }
 0x23b   : > { %v947_v33 = vpop.permute.xlu0 %946  ;;  %v4160_v34 = vpop.permute.xlu1 %839 }
 0x23c   : > { %v1452_v36 = vcombine.high %v1442_v31, %v1450_v32  ;;  %v1466_v38 = vcombine.low %v937_v25, %v947_v33  ;;  %v1451_v40 = vcombine.low %v1442_v31, %v1450_v32  ;;  %v1463_v53 = vcombine.high %v4163_v39, %v3831_v37 }
 0x23e   : > { %v4166_v41 = vrot.slane %v1466_v38, %v3984_v15  ;;  %v1533_v43 = vshrl.u32 %v1452_v36, 16  ;;  %v4168_v44 = vpack.i.b16 %v1452_v36, %v1402_v26  ;;  %v4174_v47 = vpack.i.b16 %v1451_v40, %v1401_v35 }
 0x23f   : > { %v4170_v45 = vpop.permute.xlu0 %845  ;;  %v4172_v46 = vpop.permute.xlu1 %851  ;;  %v1527_v49 = vshrl.u32 %v1451_v40, 16  ;;  %v1592_v59 = vshrl.u32 %v1463_v53, 16 }
 0x240   : > { %v1474_v51 = vcombine.high %v4166_v41, %v3831_v37  ;;  %v4178_v52 = vpack.i.b16 %v1533_v43, %v1532_v42  ;;  %1901 = vrot.lane.b32.xlu1 %v4174_v47, %s5598_s0  ;;  %v1705_v62 = vrot.slane %v4168_v44, 1  ;;  %v1711_v4 = vrot.slane %v4168_v44, 2 }
 0x241   : > { %v4184_v54 = vpack.i.b16 %v1527_v49, %v1526_v48 }
 0x242   : > { %v1593_v55 = vshrl.u32 %v1474_v51, 16  ;;  %v1591_v58 = vpack.i.b16 %v1474_v51, %v1463_v53  ;;  %v1708_v1 = vrot.slane %v4178_v52, 1  ;;  %v1714_v12 = vrot.slane %v4178_v52, 2 }
 0x243   : > { %1903 = vrot.lane.b32.xlu0 %v4184_v54, %s5598_s0  ;;  %v4188_v56 = vpop.permute.xlu0 %857  ;;  %v4190_v57 = vpop.permute.xlu1 %863 }
 0x244   : > { %v1706_v63 = vrot.slane %v1591_v58, 1  ;;  %v1594_v0 = vpack.i.b16 %v1593_v55, %v1592_v59  ;;  %v1712_v5 = vrot.slane %v1591_v58, 2  ;;  %v949_v25 = vcombine.low %v4091_v50, %v4188_v56 }
 0x245   : > { %v1085_v26 = vcombine.low %v4160_v34, %v4190_v57 }
 0x246   : > { %v4199_v2 = vsel %vm1595_vm6, %v1705_v62, %v1706_v63  ;;  %v1709_v3 = vrot.slane %v1594_v0, 1  ;;  %v4210_v10 = vsel %vm1644_vm7, %v1711_v4, %v1712_v5  ;;  %v1715_v11 = vrot.slane %v1594_v0, 2 }
 0x247   : > { %v4192_v60 = vpop.permute.xlu0 %869  ;;  %v4194_v61 = vpop.permute.xlu1 %875  ;;  %v957_v36 = vrot.slane %v949_v25, %v3976_v7  ;;  %v1093_v38 = vrot.slane %v1085_v26, %v3976_v7 }
 0x248   : > { %v4207_v9 = vsel %vm1595_vm6, %v1708_v1, %v1709_v3  ;;  %v4214_v16 = vsel %vm1644_vm7, %v1714_v12, %v1715_v11  ;;  %v965_v21 = vcombine.low %v4170_v45, %v4192_v60  ;;  %v1101_v22 = vcombine.low %v4172_v46, %v4194_v61 }
 0x249   : > { %v1102_v25 = vcombine.high %v4172_v46, %v4194_v61 }
 0x24a   : > { %v973_v31 = vrot.slane %v965_v21, %v3976_v7  ;;  %v1109_v32 = vrot.slane %v1101_v22, %v3976_v7 }
 0x24b   : > { %v4202_v6 = vpop.permute.xlu0 %881  ;;  %v4204_v8 = vpop.permute.xlu1 %887 }
 0x24c   : > { %v1013_v43 = vcombine.low %v957_v36, %v973_v31  ;;  %v1149_v48 = vcombine.low %v1093_v38, %v1109_v32  ;;  %v1014_v53 = vcombine.high %v957_v36, %v973_v31  ;;  %v1150_v55 = vcombine.high %v1093_v38, %v1109_v32 }
 0x24e   : > { %v4247_v62 = vrot.slane %v1013_v43, %v3984_v15  ;;  %v4250_v63 = vrot.slane %v1149_v48, %v3984_v15  ;;  %v1028_v3 = vrot.slane %v1014_v53, %v3984_v15  ;;  %v1164_v4 = vrot.slane %v1150_v55, %v3984_v15 }
 0x24f   : > { %v894_v13 = vpop.permute.xlu0 %893  ;;  %v900_v14 = vpop.permute.xlu1 %899 }
 0x253   : > { %v4216_v17 = vpop.permute.xlu0 %905  ;;  %v4218_v18 = vpop.permute.xlu1 %911 }
 0x254   : > { %v981_v23 = vcombine.low %v4202_v6, %v4216_v17  ;;  %v1117_v24 = vcombine.low %v4204_v8, %v4218_v18  ;;  %v982_v26 = vcombine.high %v4202_v6, %v4216_v17 }
 0x256   : > { %v989_v33 = vrot.slane %v981_v23, %v3976_v7  ;;  %v1125_v35 = vrot.slane %v1117_v24, %v3976_v7  ;;  %v966_v24 = vcombine.high %v4170_v45, %v4192_v60 }
 0x257   : > { %v918_v19 = vpop.permute.xlu0 %917  ;;  %v924_v29 = vpop.permute.xlu1 %923 }
 0x258   : > { %v997_v30 = vcombine.low %v894_v13, %v918_v19  ;;  %v1133_v20 = vcombine.low %v900_v14, %v924_v29  ;;  %v998_v12 = vcombine.high %v894_v13, %v918_v19  ;;  %v950_v13 = vcombine.high %v4091_v50, %v4188_v56 }
 0x259   : > { %v980_v50 = vrot.slane %v966_v24, %v3976_v7  ;;  %v996_v56 = vrot.slane %v982_v26, %v3976_v7 }
 0x25a   : > { %v1005_v27 = vrot.slane %v997_v30, %v3976_v7  ;;  %v1141_v28 = vrot.slane %v1133_v20, %v3976_v7  ;;  %v1134_v20 = vcombine.high %v900_v14, %v924_v29  ;;  %v1086_v14 = vcombine.high %v4160_v34, %v4190_v57 }
 0x25b   : > { %v4276_v19 = vpop.permute.xlu0 %929  ;;  %v4279_v46 = vrot.slane %v998_v12, %v3976_v7  ;;  %v4284_v61 = vpop.permute.xlu1 %934  ;;  %v4292_v34 = vrot.slane %v1102_v25, %v3976_v7  ;;  %v964_v29 = vrot.slane %v950_v13, %v3976_v7 }
 0x25c   : > { %v1045_v40 = vcombine.low %v989_v33, %v1005_v27  ;;  %v1181_v42 = vcombine.low %v1125_v35, %v1141_v28  ;;  %v1046_v49 = vcombine.high %v989_v33, %v1005_v27  ;;  %v1182_v51 = vcombine.high %v1125_v35, %v1141_v28 }
 0x25d   : > { %v1118_v27 = vcombine.high %v4204_v8, %v4218_v18  ;;  %v4282_v60 = vrot.slane %v1134_v20, %v3976_v7  ;;  %v1100_v28 = vrot.slane %v1086_v14, %v3976_v7  ;;  %v1061_v31 = vcombine.low %v996_v56, %v4279_v46 }
 0x25e   : > { %v4241_v58 = vrot.slane %v1045_v40, %v3984_v15  ;;  %v4244_v59 = vrot.slane %v1181_v42, %v3984_v15  ;;  %v1060_v0 = vrot.slane %v1046_v49, %v3984_v15  ;;  %v1196_v1 = vrot.slane %v1182_v51, %v3984_v15 }
 0x25f   : > { %v1132_v57 = vrot.slane %v1118_v27, %v3976_v7  ;;  %v4304_v36 = vpop.permute.xlu0 %939  ;;  %v1029_v40 = vcombine.low %v964_v29, %v980_v50  ;;  %v1165_v42 = vcombine.low %v1100_v28, %v4292_v34  ;;  %v4309_v43 = vpop.permute.xlu1 %944  ;;  %v1069_v48 = vrot.slane %v1061_v31, %v3984_v15 }
 0x260   : > { %v1078_v5 = vcombine.high %v4247_v62, %v4241_v58  ;;  %v1214_v11 = vcombine.high %v4250_v63, %v4244_v59  ;;  %v1079_v30 = vcombine.low %v1028_v3, %v1060_v0  ;;  %v1215_v21 = vcombine.low %v1164_v4, %v1196_v1 }
 0x261   : > { %v1080_v32 = vcombine.high %v1028_v3, %v1060_v0  ;;  %v1197_v33 = vcombine.low %v1132_v57, %v4282_v60  ;;  %v1216_v35 = vcombine.high %v1164_v4, %v1196_v1  ;;  %v1236_v51 = vcombine.high %v4304_v36, %v3831_v37 }
 0x262   : > { %v4260_v22 = vpack.i.b16 %v1214_v11, %v1078_v5  ;;  %v1484_v23 = vshrl.u32 %v1078_v5, 16  ;;  %v1485_v45 = vshrl.u32 %v1214_v11, 16  ;;  %v4286_v6 = vpack.i.b16 %v1215_v21, %v1079_v30 }
 0x263   : > { %v1490_v8 = vshrl.u32 %v1079_v30, 16  ;;  %v1491_v17 = vshrl.u32 %v1215_v21, 16  ;;  %v1205_v49 = vrot.slane %v1197_v33, %v3984_v15  ;;  %v4319_v53 = vpack.i.b16 %v1216_v35, %v1080_v32 }
 0x264   : > { %1781 = vrot.lane.b32.xlu1 %v4260_v22, %s5599_s1  ;;  %v4288_v18 = vpack.i.b16 %v1485_v45, %v1484_v23  ;;  %v1496_v55 = vshrl.u32 %v1080_v32, 16  ;;  %v1497_v0 = vshrl.u32 %v1216_v35, 16  ;;  %v1302_v1 = vcombine.high %v4309_v43, %v3831_v37 }
 0x265   : > { %v4306_v38 = vpack.i.b16 %v1491_v17, %v1490_v8  ;;  %v1037_v3 = vrot.slane %v1029_v40, %v3984_v15  ;;  %v1173_v4 = vrot.slane %v1165_v42, %v3984_v15  ;;  %v1221_v5 = vcombine.high %v4276_v19, %v3831_v37 }
 0x266   : > { %1783 = vrot.lane.b32.xlu0 %v4288_v18, %s5599_s1  ;;  %v1287_v11 = vcombine.high %v4284_v61, %v3831_v37  ;;  %v1250_v20 = vrot.slane %v1236_v51, %v3976_v7  ;;  %v1316_v21 = vrot.slane %v1302_v1, %v3976_v7  ;;  %v4335_v23 = vpack.i.b16 %v1497_v0, %v1496_v55 }
 0x267   : > { %v1081_v12 = vcombine.low %v1037_v3, %v1069_v48  ;;  %v1217_v30 = vcombine.low %v1173_v4, %v1205_v49  ;;  %v1235_v24 = vrot.slane %v1221_v5, %v3976_v7  ;;  %v1030_v8 = vcombine.high %v964_v29, %v980_v50 }
 0x268   : > { %1877 = vrot.lane.b32.xlu1 %v4286_v6, %s5598_s0  ;;  %v1301_v25 = vrot.slane %v1287_v11, %v3976_v7  ;;  %v1062_v17 = vcombine.high %v996_v56, %v4279_v46  ;;  %v1082_v31 = vcombine.high %v1037_v3, %v1069_v48  ;;  %v1198_v32 = vcombine.high %v1132_v57, %v4282_v60 }
 0x269   : > { %v1267_v26 = vcombine.low %v1235_v24, %v1250_v20  ;;  %v4343_v27 = vpack.i.b16 %v1217_v30, %v1081_v12  ;;  %v1502_v13 = vshrl.u32 %v1081_v12, 16  ;;  %v1503_v14 = vshrl.u32 %v1217_v30, 16 }
 0x26a   : > { %1879 = vrot.lane.b32.xlu0 %v4306_v38, %s5598_s0  ;;  %v1333_v45 = vcombine.low %v1301_v25, %v1316_v21  ;;  %v1218_v33 = vcombine.high %v1173_v4, %v1205_v49  ;;  %v1166_v40 = vcombine.high %v1100_v28, %v4292_v34  ;;  %v1268_v50 = vcombine.high %v1235_v24, %v1250_v20 }
 0x26b   : > { %v4352_v35 = vrot.slane %v1267_v26, %v3984_v15  ;;  %v4358_v51 = vpack.i.b16 %v1503_v14, %v1502_v13  ;;  %v1334_v29 = vcombine.high %v1301_v25, %v1316_v21  ;;  %v1044_v46 = vrot.slane %v1030_v8, %v3984_v15 }
 0x26c   : > { %1785 = vrot.lane.b32.xlu1 %v4286_v6, %s5599_s1  ;;  %v4356_v42 = vrot.slane %v1333_v45, %v3984_v15  ;;  %v1076_v60 = vrot.slane %v1062_v17, %v3984_v15  ;;  %v1212_v56 = vrot.slane %v1198_v32, %v3984_v15  ;;  %v4367_v34 = vpack.i.b16 %v1218_v33, %v1082_v31 }
 0x26d   : > { %5600 = vst [vmem:[#allocation11_spill] sm:$0xff] %v4358_v51  ;;  %v4371_v57 = vcombine.high %v4352_v35, %v3831_v37  ;;  %v1180_v28 = vrot.slane %v1166_v40, %v3984_v15  ;;  %v1508_v48 = vshrl.u32 %v1082_v31, 16  ;;  %v1509_v49 = vshrl.u32 %v1218_v33, 16 }
 0x26e   : > { %1787 = vrot.lane.b32.xlu0 %v4306_v38, %s5599_s1  ;;  %5601 = vst [vmem:[#allocation12_spill] sm:$0xff] %v4367_v34  ;;  %v4376_v55 = vcombine.high %v4356_v42, %v3831_v37  ;;  %v4379_v0 = vrot.slane %v1268_v50, %v3984_v15  ;;  %v4382_v1 = vrot.slane %v1334_v29, %v3984_v15  ;;  %v1562_v3 = vshrl.u32 %v4352_v35, 16 }
 0x26f   : > { %v1563_v4 = vshrl.u32 %v4356_v42, 16  ;;  %v1083_v5 = vcombine.low %v1044_v46, %v1076_v60  ;;  %v1219_v11 = vcombine.low %v1180_v28, %v1212_v56  ;;  %v1568_v30 = vshrl.u32 %v4371_v57, 16 }
 0x270   : > { %1881 = vrot.lane.b32.xlu1 %v4319_v53, %s5598_s0  ;;  %v4393_v20 = vpack.i.b16 %v1509_v49, %v1508_v48  ;;  %v1569_v21 = vshrl.u32 %v4376_v55, 16  ;;  %v4400_v24 = vcombine.high %v4379_v0, %v3831_v37  ;;  %v4404_v25 = vcombine.high %v4382_v1, %v3831_v37 }
 0x271   : > { %v4390_v12 = vpack.i.b16 %v1563_v4, %v1562_v3  ;;  %v1574_v13 = vshrl.u32 %v4379_v0, 16  ;;  %v4411_v14 = vpack.i.b16 %v1219_v11, %v1083_v5  ;;  %v1575_v45 = vshrl.u32 %v4382_v1, 16 }
 0x272   : > { %1883 = vrot.lane.b32.xlu0 %v4335_v23, %s5598_s0  ;;  %v4408_v26 = vpack.i.b16 %v1569_v21, %v1568_v30  ;;  %v1514_v8 = vshrl.u32 %v1083_v5, 16  ;;  %v1515_v17 = vshrl.u32 %v1219_v11, 16  ;;  %v1243_v31 = vrot.slane %v4304_v36, %v3976_v7 }
 0x273   : > { %5602 = vst [vmem:[#allocation13_spill] sm:$0xff] %v4411_v14  ;;  %v1309_v32 = vrot.slane %v4309_v43, %v3976_v7  ;;  %v4420_v33 = vpack.i.b16 %v1575_v45, %v1574_v13  ;;  %v1580_v40 = vshrl.u32 %v4400_v24, 16  ;;  %v1581_v50 = vshrl.u32 %v4404_v25, 16 }
 0x274   : > { %1789 = vrot.lane.b32.xlu1 %v4319_v53, %s5599_s1  ;;  %v1228_v29 = vrot.slane %v4276_v19, %v3976_v7  ;;  %v1294_v48 = vrot.slane %v4284_v61, %v3976_v7  ;;  %v1084_v36 = vcombine.high %v1044_v46, %v1076_v60  ;;  %v1220_v43 = vcombine.high %v1180_v28, %v1212_v56 }
 0x275   : > { %v4430_v49 = vpack.i.b16 %v1581_v50, %v1580_v40  ;;  %v4432_v5 = vpack.i.b16 %v1515_v17, %v1514_v8  ;;  %v1587_v19 = vshrl.u32 %v4166_v41, 16  ;;  %v4443_v61 = vpack.i.b16 %v4166_v41, %v4163_v39 }
 0x276   : > { %1791 = vrot.lane.b32.xlu0 %v4335_v23, %s5599_s1  ;;  %v1251_v3 = vcombine.low %v1228_v29, %v1243_v31  ;;  %v1317_v4 = vcombine.low %v1294_v48, %v1309_v32  ;;  %v4439_v7 = vpack.i.b16 %v1220_v43, %v1084_v36  ;;  %v1520_v46 = vshrl.u32 %v1084_v36, 16 }
 0x277   : > { %v1521_v60 = vshrl.u32 %v1220_v43, 16  ;;  %v1586_v11 = vshrl.u32 %v4163_v39, 16  ;;  %v4456_v30 = vcombine.low %v4247_v62, %v4241_v58  ;;  %v4460_v41 = vcombine.low %v4250_v63, %v4244_v59 }
 0x278   : > { %1885 = vrot.lane.b32.xlu1 %v4343_v27, %s5598_s0  ;;  %5603 = vst [vmem:[#allocation14_spill] sm:$0xff] %v4439_v7  ;;  %v4446_v56 = vrot.slane %v1251_v3, %v3984_v15  ;;  %v4449_v28 = vrot.slane %v1317_v4, %v3984_v15  ;;  %v1694_v13 = vrot.slane %v4443_v61, 1  ;;  %v1252_v8 = vcombine.high %v1228_v29, %v1243_v31 }
 0x279   : > { %v4464_v21 = vpack.i.b16 %v1521_v60, %v1520_v46  ;;  %v4467_v45 = vpack.i.b16 %v1587_v19, %v1586_v11  ;;  %v1318_v17 = vcombine.high %v1294_v48, %v1309_v32  ;;  %v1693_v62 = vrot.slane %v4174_v47, 1 }
 0x27a   : > { %1887 = vrot.lane.b32.xlu0 %v4358_v51, %s5598_s0  ;;  %v1537_v39 = vpack.i.b16 %v4449_v28, %v4446_v56  ;;  %v4475_v58 = vcombine.high %v4446_v56, %v3831_v37  ;;  %v4479_v59 = vcombine.high %v4449_v28, %v3831_v37  ;;  %v4486_v63 = vpack.i.b16 %v4460_v41, %v4456_v30 }
 0x27b   : > { %v4489_v31 = vsel %vm1595_vm6, %v1693_v62, %v1694_v13  ;;  %v1697_v32 = vrot.slane %v4467_v45, 1  ;;  %v4493_v50 = vrot.slane %v1252_v8, %v3984_v15  ;;  %v4496_v29 = vrot.slane %v1318_v17, %v3984_v15 }
 0x27c   : > { %1793 = vrot.lane.b32.xlu1 %v4343_v27, %s5599_s1  ;;  %v1597_v40 = vrot.slane %v1537_v39, 1  ;;  %v1543_v48 = vpack.i.b16 %v4479_v59, %v4475_v58  ;;  %v1696_v36 = vrot.slane %v4184_v54, 1  ;;  %v1596_v43 = vrot.slane %v4486_v63, 1 }
 0x27d   : > { %v1646_v15 = vrot.slane %v1537_v39, 2  ;;  %v1549_v46 = vpack.i.b16 %v4496_v29, %v4493_v50  ;;  %v4515_v60 = vcombine.high %v4493_v50, %v3831_v37  ;;  %v4519_v11 = vcombine.high %v4496_v29, %v3831_v37 }
 0x27e   : > { %1795 = vrot.lane.b32.xlu0 %v4358_v51, %s5599_s1  ;;  %v4507_v3 = vsel %vm1595_vm6, %v1696_v36, %v1697_v32  ;;  %v1598_v4 = vsel %vm1595_vm6, %v1596_v43, %v1597_v40  ;;  %v1603_v19 = vrot.slane %v1543_v48, 1  ;;  %v1645_v13 = vrot.slane %v4486_v63, 2 }
 0x27f   : > { %v1602_v39 = vrot.slane %v4260_v22, 1  ;;  %v1609_v62 = vrot.slane %v1549_v46, 1  ;;  %v4530_v32 = vpack.i.b16 %v4519_v11, %v4515_v60  ;;  %v1608_v37 = vrot.slane %v4286_v6, 1 }
 0x280   : > { %1889 = vrot.lane.b32.xlu1 %v4367_v34, %s5598_s0  ;;  %v1647_v8 = vsel %vm1644_vm7, %v1645_v13, %v1646_v15  ;;  %v1652_v40 = vrot.slane %v1543_v48, 2  ;;  %v1651_v15 = vrot.slane %v4260_v22, 2 }
 0x281   : > { %v1604_v17 = vsel %vm1595_vm6, %v1602_v39, %v1603_v19  ;;  %v1610_v36 = vsel %vm1595_vm6, %v1608_v37, %v1609_v62  ;;  %v1615_v43 = vrot.slane %v4530_v32, 1  ;;  %v1614_v19 = vrot.slane %v4319_v53, 1 }
 0x282   : > { %1891 = vrot.lane.b32.xlu0 %v4393_v20, %s5598_s0  ;;  %v1653_v13 = vsel %vm1644_vm7, %v1651_v15, %v1652_v40  ;;  %v1478_v40 = vshrl.u32 %v4456_v30, 16 }
 0x283   : > { %v4546_v48 = vsel %vm1595_vm6, %v1614_v19, %v1615_v43  ;;  %v1632_v19 = vrot.slane %v4411_v14, 1 }
 0x284   : > { %1797 = vrot.lane.b32.xlu1 %v4367_v34, %s5599_s1 }
 0x286   : > { %1799 = vrot.lane.b32.xlu0 %v4393_v20, %s5599_s1 }
 0x288   : > { %1893 = vrot.lane.b32.xlu1 %v4411_v14, %s5598_s0 }
 0x28a   : > { %1895 = vrot.lane.b32.xlu0 %v4432_v5, %s5598_s0 }
 0x28c   : > { %1801 = vrot.lane.b32.xlu1 %v4411_v14, %s5599_s1 }
 0x28e   : > { %1803 = vrot.lane.b32.xlu0 %v4432_v5, %s5599_s1 }
 0x290   : > { %1897 = vrot.lane.b32.xlu1 %v4439_v7, %s5598_s0 }
 0x292   : > { %1899 = vrot.lane.b32.xlu0 %v4464_v21, %s5598_s0 }
 0x294   : > { %1805 = vrot.lane.b32.xlu1 %v4439_v7, %s5599_s1 }
 0x296   : > { %1807 = vrot.lane.b32.xlu0 %v4464_v21, %s5599_s1 }
 0x298   : > { %1933 = vrot.lane.b32.xlu1 %v4489_v31, %s5604_s2 }
 0x29a   : > { %1935 = vrot.lane.b32.xlu0 %v4507_v3, %s5604_s2 }
 0x29c   : > { %1717 = vrot.lane.b32.xlu1 %v1598_v4, %s5605_s11  ;;  %v4539_v4 = vpack.i.b16 %v4356_v42, %v4352_v35  ;;  %v1620_v35 = vrot.slane %v4343_v27, 1  ;;  %v1658_v42 = vrot.slane %v1549_v46, 2  ;;  %v1657_v46 = vrot.slane %v4286_v6, 2 }
 0x29e   : > { %1721 = vrot.lane.b32.xlu0 %v1604_v17, %s5605_s11  ;;  %v1621_v39 = vrot.slane %v4539_v4, 1  ;;  %v1659_v43 = vsel %vm1644_vm7, %v1657_v46, %v1658_v42  ;;  %v1545_v42 = vshrl.u32 %v4479_v59, 16  ;;  %v1550_v59 = vshrl.u32 %v4493_v50, 16 }
 0x29f   : > { %v1654_v50 = vrot.slane %v4288_v18, 2 }
 0x2a0   : > { %1749 = vrot.lane.b32.xlu1 %v1647_v8, %s5606_s18  ;;  %v4552_v8 = vpack.i.b16 %v4376_v55, %v4371_v57  ;;  %v4562_v62 = vsel %vm1595_vm6, %v1620_v35, %v1621_v39  ;;  %v1538_v57 = vshrl.u32 %v4446_v56, 16  ;;  %v1539_v55 = vshrl.u32 %v4449_v28, 16 }
 0x2a1   : > { %v1544_v35 = vshrl.u32 %v4475_v58, 16 }
 0x2a2   : > { %1725 = vrot.lane.b32.xlu0 %v1610_v36, %s5605_s11  ;;  %v1627_v37 = vrot.slane %v4552_v8, 1  ;;  %v1540_v28 = vpack.i.b16 %v1539_v55, %v1538_v57 }
 0x2a3   : > { %v1546_v46 = vpack.i.b16 %v1545_v42, %v1544_v35  ;;  %v4616_v42 = vpack.i.b16 %v4404_v25, %v4400_v24  ;;  %v1670_v25 = vrot.slane %v4539_v4, 2 }
 0x2a4   : > { %1813 = vrot.lane.b32.xlu1 %v1604_v17, %s5607_s14  ;;  %v4559_v17 = vpack.i.b16 %v4382_v1, %v4379_v0  ;;  %v1479_v0 = vshrl.u32 %v4460_v41, 16  ;;  %v1626_v1 = vrot.slane %v4367_v34, 1  ;;  %v1600_v39 = vrot.slane %v1540_v28, 1 }
 0x2a5   : > { %v1649_v55 = vrot.slane %v1540_v28, 2  ;;  %v1606_v58 = vrot.slane %v1546_v46, 1  ;;  %v1655_v28 = vrot.slane %v1546_v46, 2  ;;  %v1638_v46 = vrot.slane %v4439_v7, 1 }
 0x2a6   : > { %1729 = vrot.lane.b32.xlu0 %v4546_v48, %s5605_s11  ;;  %v4576_v15 = vsel %vm1595_vm6, %v1626_v1, %v1627_v37  ;;  %v1633_v56 = vrot.slane %v4559_v17, 1  ;;  %v4583_v30 = vpack.i.b16 %v1479_v0, %v1478_v40  ;;  %v1551_v0 = vshrl.u32 %v4496_v29, 16 }
 0x2a7   : > { %v1605_v1 = vrot.slane %v4288_v18, 1  ;;  %v1656_v35 = vsel %vm1644_vm7, %v1654_v50, %v1655_v28 }
 0x2a8   : > { %1845 = vrot.lane.b32.xlu1 %v1653_v13, %s5608_s16  ;;  %v4586_v41 = vsel %vm1595_vm6, %v1632_v19, %v1633_v56  ;;  %v1599_v37 = vrot.slane %v4583_v30, 1  ;;  %v1552_v19 = vpack.i.b16 %v1551_v0, %v1550_v59 }
 0x2a9   : > { %v1607_v56 = vsel %vm1595_vm6, %v1605_v1, %v1606_v58 }
 0x2aa   : > { %1733 = vrot.lane.b32.xlu0 %v4562_v62, %s5605_s11  ;;  %v1601_v57 = vsel %vm1595_vm6, %v1599_v37, %v1600_v39  ;;  %v1663_v39 = vrot.slane %v4319_v53, 2  ;;  %v1611_v37 = vrot.slane %v4306_v38, 1  ;;  %v1661_v4 = vrot.slane %v1552_v19, 2 }
 0x2ac   : > { %1909 = vrot.lane.b32.xlu1 %v1610_v36, %s5604_s2 }
 0x2ae   : > { %1737 = vrot.lane.b32.xlu0 %v4576_v15, %s5605_s11 }
 0x2b0   : > { %1941 = vrot.lane.b32.xlu1 %v1659_v43, %s5609_s21 }
 0x2b2   : > { %1741 = vrot.lane.b32.xlu0 %v4586_v41, %s5605_s11  ;;  %v4634_v24 = vpop.permute.xlu1 %1901 }
 0x2b3   : > { %5610 = vst [vmem:[#allocation15_spill] sm:$0xff] %v4634_v24  ;;  %v1682_v24 = vrot.slane %v4559_v17, 2  ;;  %v1672_v17 = vrot.slane %v4358_v51, 2 }
 0x2b4   : > { %1753 = vrot.lane.b32.xlu1 %v1653_v13, %s5606_s18  ;;  %v1648_v13 = vrot.slane %v4583_v30, 2 }
 0x2b5   : > { %v4645_v59 = vpop.permute.xlu0 %1903 }
 0x2b6   : > { %1719 = vrot.lane.b32.xlu0 %v1601_v57, %s5605_s11  ;;  %v1650_v40 = vsel %vm1644_vm7, %v1648_v13, %v1649_v55  ;;  %v1639_v55 = vrot.slane %v4616_v42, 1  ;;  %5611 = vst [vmem:[#allocation16_spill] sm:$0xff] %v4645_v59 }
 0x2b8   : > { %1817 = vrot.lane.b32.xlu1 %v1610_v36, %s5607_s14  ;;  %v1664_v36 = vrot.slane %v4530_v32, 2  ;;  %v1612_v32 = vrot.slane %v1552_v19, 1  ;;  %v4626_v13 = vsel %vm1595_vm6, %v1638_v46, %v1639_v55  ;;  %v1617_v19 = vrot.slane %v4335_v23, 1 }
 0x2b9   : > { %v1676_v46 = vrot.slane %v4552_v8, 2  ;;  %v1666_v8 = vrot.slane %v4335_v23, 2 }
 0x2ba   : > { %1751 = vrot.lane.b32.xlu0 %v1650_v40, %s5606_s18  ;;  %v1665_v29 = vsel %vm1644_vm7, %v1663_v39, %v1664_v36  ;;  %v1613_v57 = vsel %vm1595_vm6, %v1611_v37, %v1612_v32  ;;  %v1557_v40 = vshrl.u32 %v4519_v11, 16 }
 0x2bc   : > { %1849 = vrot.lane.b32.xlu1 %v1659_v43, %s5608_s16 }
 0x2be   : > { %1815 = vrot.lane.b32.xlu0 %v1607_v56, %s5607_s14 }
 0x2c0   : > { %1913 = vrot.lane.b32.xlu1 %v4546_v48, %s5604_s2 }
 0x2c2   : > { %1847 = vrot.lane.b32.xlu0 %v1656_v35, %s5608_s16 }
 0x2c4   : > { %1945 = vrot.lane.b32.xlu1 %v1665_v29, %s5609_s21 }
 0x2c6   : > { %1911 = vrot.lane.b32.xlu0 %v1613_v57, %s5604_s2 }
 0x2c8   : > { %1757 = vrot.lane.b32.xlu1 %v1659_v43, %s5606_s18  ;;  %v1556_v43 = vshrl.u32 %v4515_v60, 16  ;;  %v1660_v60 = vrot.slane %v4306_v38, 2 }
 0x2ca   : > { %1745 = vrot.lane.b32.xlu0 %v4626_v13, %s5605_s11  ;;  %v1558_v1 = vpack.i.b16 %v1557_v40, %v1556_v43 }
 0x2cc   : > { %1821 = vrot.lane.b32.xlu1 %v4546_v48, %s5607_s14  ;;  %v1669_v48 = vrot.slane %v4343_v27, 2  ;;  %v1618_v28 = vrot.slane %v1558_v1, 1  ;;  %v1667_v40 = vrot.slane %v1558_v1, 2  ;;  %v1623_v1 = vrot.slane %v4358_v51, 1  ;;  %v3710_v51 = vld [vmem:[%s3969_s26 + $0x8] sm:$0xff]  }
 0x2ce   : > { %1723 = vrot.lane.b32.xlu0 %v1607_v56, %s5605_s11  ;;  %v1671_v0 = vsel %vm1644_vm7, %v1669_v48, %v1670_v25  ;;  %v4656_v56 = vsel %vm1644_vm7, %v1660_v60, %v1661_v4  ;;  %v4699_v60 = vsel %vm1644_vm7, %v1666_v8, %v1667_v40 }
 0x2d0   : > { %1853 = vrot.lane.b32.xlu1 %v1665_v29, %s5608_s16 }
 0x2d2   : > { %1755 = vrot.lane.b32.xlu0 %v1656_v35, %s5606_s18  ;;  %v1619_v35 = vsel %vm1595_vm6, %v1617_v19, %v1618_v28  ;;  %v1624_v28 = vrot.slane %v4390_v12, 1 }
 0x2d4   : > { %1917 = vrot.lane.b32.xlu1 %v4562_v62, %s5604_s2 }
 0x2d6   : > { %v4643_v58 = vpop.permute.xlu1 %1781  ;;  %1819 = vrot.lane.b32.xlu0 %v1613_v57, %s5607_s14 }
 0x2d8   : > { %1949 = vrot.lane.b32.xlu1 %v1671_v0, %s5609_s21  ;;  %v4653_v11 = vpop.permute.xlu0 %1783 }
 0x2da   : > { %v4651_v36 = vpop.permute.xlu1 %1877  ;;  %1851 = vrot.lane.b32.xlu0 %v4656_v56, %s5608_s16 }
 0x2dc   : > { %1761 = vrot.lane.b32.xlu1 %v1665_v29, %s5606_s18  ;;  %v4664_v50 = vpop.permute.xlu0 %1879 }
 0x2de   : > { %v4662_v39 = vpop.permute.xlu1 %1785  ;;  %1915 = vrot.lane.b32.xlu0 %v1619_v35, %s5604_s2 }
 0x2e0   : > { %1825 = vrot.lane.b32.xlu1 %v4562_v62, %s5607_s14  ;;  %v4672_v29 = vpop.permute.xlu0 %1787  ;;  %v1675_v62 = vrot.slane %v4367_v34, 2 }
 0x2e2   : > { %v4670_v32 = vpop.permute.xlu1 %1881  ;;  %1727 = vrot.lane.b32.xlu0 %v1613_v57, %s5605_s11  ;;  %v1677_v57 = vsel %vm1644_vm7, %v1675_v62, %v1676_v46  ;;  %v1625_v62 = vsel %vm1595_vm6, %v1623_v1, %v1624_v28 }
 0x2e4   : > { %1857 = vrot.lane.b32.xlu1 %v1671_v0, %s5608_s16  ;;  %v4678_v55 = vpop.permute.xlu0 %1883 }
 0x2e6   : > { %v4676_v37 = vpop.permute.xlu1 %1789  ;;  %1759 = vrot.lane.b32.xlu0 %v4656_v56, %s5606_s18 }
 0x2e8   : > { %1921 = vrot.lane.b32.xlu1 %v4576_v15, %s5604_s2  ;;  %v4688_v43 = vpop.permute.xlu0 %1791 }
 0x2ea   : > { %v4686_v25 = vpop.permute.xlu1 %1885  ;;  %1823 = vrot.lane.b32.xlu0 %v1619_v35, %s5607_s14 }
 0x2ec   : > { %1953 = vrot.lane.b32.xlu1 %v1677_v57, %s5609_s21  ;;  %v4696_v4 = vpop.permute.xlu0 %1887 }
 0x2ed   : > { %5612 = vst [vmem:[#allocation17_spill] sm:$0xff] %v4696_v4 }
 0x2ee   : > { %v4694_v48 = vpop.permute.xlu1 %1793  ;;  %1855 = vrot.lane.b32.xlu0 %v4699_v60, %s5608_s16 }
 0x2f0   : > { %1765 = vrot.lane.b32.xlu1 %v1671_v0, %s5606_s18  ;;  %v4708_v46 = vpop.permute.xlu0 %1795 }
 0x2f1   : > { %5613 = vst [vmem:[#allocation18_spill] sm:$0xff] %v4708_v46 }
 0x2f2   : > { %v4706_v19 = vpop.permute.xlu1 %1889  ;;  %1919 = vrot.lane.b32.xlu0 %v1625_v62, %s5604_s2 }
 0x2f4   : > { %1829 = vrot.lane.b32.xlu1 %v4576_v15, %s5607_s14  ;;  %v4716_v0 = vpop.permute.xlu0 %1891  ;;  %v1681_v15 = vrot.slane %v4411_v14, 2 }
 0x2f5   : > { %5614 = vst [vmem:[#allocation19_spill] sm:$0xff] %v4716_v0 }
 0x2f6   : > { %v4714_v40 = vpop.permute.xlu1 %1797  ;;  %1731 = vrot.lane.b32.xlu0 %v1619_v35, %s5605_s11  ;;  %v1683_v35 = vsel %vm1644_vm7, %v1681_v15, %v1682_v24 }
 0x2f8   : > { %1861 = vrot.lane.b32.xlu1 %v1677_v57, %s5608_s16  ;;  %v4722_v59 = vpop.permute.xlu0 %1799 }
 0x2f9   : > { %5615 = vst [vmem:[#allocation20_spill] sm:$0xff] %v4722_v59  ;;  %v1673_v59 = vrot.slane %v4390_v12, 2  ;;  %v1629_v12 = vrot.slane %v4393_v20, 1 }
 0x2fa   : > { %v4720_v8 = vpop.permute.xlu1 %1893  ;;  %1763 = vrot.lane.b32.xlu0 %v4699_v60, %s5606_s18 }
 0x2fb   : > { %v4744_v14 = vsel %vm1644_vm7, %v1672_v17, %v1673_v59  ;;  %v3706_v17 = vld [vmem:[%s5529_s3] sm:$0xff]  }
 0x2fc   : > { %1925 = vrot.lane.b32.xlu1 %v4586_v41, %s5604_s2  ;;  %v4732_v1 = vpop.permute.xlu0 %1895  ;;  %3486 = vmatprep.subr.bf16.mxu1 %v3706_v17 }
 0x2fd   : > { %5617 = vst [vmem:[#allocation22_spill] sm:$0xff] %v4732_v1  ;;  %v1630_v1 = vrot.slane %v4408_v26, 1  ;;  %3487 = vmatpush3.bf16.msra.mxu1 %v3706_v17 }
 0x2fe   : > { %v4730_v28 = vpop.permute.xlu1 %1801  ;;  %1827 = vrot.lane.b32.xlu0 %v1625_v62, %s5607_s14 }
 0x2ff   : > { %5616 = vst [vmem:[#allocation21_spill] sm:$0xff] %v4730_v28  ;;  %v1679_v28 = vrot.slane %v4408_v26, 2 }
 0x300   : > { %1957 = vrot.lane.b32.xlu1 %v1683_v35, %s5609_s21  ;;  %v4741_v34 = vpop.permute.xlu0 %1803 }
 0x301   : > { %5619 = vst [vmem:[#allocation24_spill] sm:$0xff] %v4741_v34 }
 0x302   : > { %v4739_v0 = vpop.permute.xlu1 %1897  ;;  %1859 = vrot.lane.b32.xlu0 %v4744_v14, %s5608_s16 }
 0x303   : > { %5618 = vst [vmem:[#allocation23_spill] sm:$0xff] %v4739_v0  ;;  %v4756_v0 = vsel %vm1595_vm6, %v1629_v12, %v1630_v1 }
 0x304   : > { %1769 = vrot.lane.b32.xlu1 %v1677_v57, %s5606_s18  ;;  %v4753_v15 = vpop.permute.xlu0 %1899 }
 0x305   : > { %5621 = vst [vmem:[#allocation26_spill] sm:$0xff] %v4753_v15 }
 0x306   : > { %v4751_v24 = vpop.permute.xlu1 %1805  ;;  %1923 = vrot.lane.b32.xlu0 %v4756_v0, %s5604_s2 }
 0x307   : > { %5620 = vst [vmem:[#allocation25_spill] sm:$0xff] %v4751_v24 }
 0x308   : > { %1833 = vrot.lane.b32.xlu1 %v4586_v41, %s5607_s14  ;;  %v4764_v57 = vpop.permute.xlu0 %1807  ;;  %v1688_v41 = vrot.slane %v4616_v42, 2  ;;  %v3708_v42 = vld [vmem:[%s5529_s3 + $0x10] ss:$0 sps:$4 sm:$0x33]  }
 0x309   : > { %5623 = vst [vmem:[#allocation28_spill] sm:$0xff] %v4764_v57  ;;  %v3707_v57 = vld [vmem:[%s5529_s3 + $0x8] sm:$0xff]   ;;  %v2306_v17 = vsel %vm2304_vm8, %v3708_v42, 0 }
 0x30a   : > { %v4762_v59 = vpop.permute.xlu1 %1933  ;;  %1811 = vrot.lane.b32.xlu0 %v4184_v54, %s5599_s1  ;;  %3488 = vmatprep.subr.bf16.mxu1 %v3707_v57 }
 0x30b   : > { %5622 = vst [vmem:[#allocation27_spill] sm:$0xff] %v4762_v59  ;;  %v1687_v59 = vrot.slane %v4439_v7, 2  ;;  %3489 = vmatpush3.bf16.msra.mxu1 %v3707_v57  ;;  %v3709_v7 = vld [vmem:[%s3969_s26] sm:$0xff]  }
 0x30c   : > { %1865 = vrot.lane.b32.xlu1 %v1683_v35, %s5608_s16  ;;  %v4772_v12 = vpop.permute.xlu0 %1935  ;;  %3609 = vmatprep.subr.msk.bf16.mxu1 %vm2304_vm8, %v3708_v42  ;;  %v1678_v42 = vrot.slane %v4393_v20, 2  ;;  %vm5630_vm8 = vmmov %vm5625_vm12 }
 0x30d   : > { %5624 = vst [vmem:[#allocation29_spill] sm:$0xff] %v4772_v12  ;;  %v4783_v12 = vsel %vm1644_vm7, %v1687_v59, %v1688_v41  ;;  %3526 = vmatprep.mubr.msk.bf16.mxu0 %vm2589_vm11, %v3709_v7 }
 0x30e   : > { %v1718_v1 = vpop.permute.xlu1 %1717  ;;  %1735 = vrot.lane.b32.xlu0 %v1625_v62, %s5605_s11  ;;  %v2501_v62 = vld [vmem:[%s5530_s4] sm:$0x7] }
 0x30f   : > { %3610 = vmatprep.subr.msk.bf16.mxu0 %vm2638_vm10, %v2501_v62  ;;  %v4799_v41 = vsel %vm2638_vm10, %v2501_v62, 0  ;;  %v1975_v24 = vsel %vm709_vm1, %v4486_v63, %v1718_v1  ;;  %3491 = vmatpush3.bf16.msra.mxu1 %v2306_v17 }
 0x310   : > { %1929 = vrot.lane.b32.xlu1 %v4626_v13, %s5604_s2  ;;  %v1722_v34 = vpop.permute.xlu0 %1721  ;;  %3525 = vmatpush3.bf16.msra.mxu0 %v4799_v41 }
 0x311   : > { %3611 = vmatprep.subr.msk.bf16.mxu1 %vm2638_vm10, %v2501_v62  ;;  %v3712_v62 = vld [vmem:[%s3969_s26 + $0x18] sm:$0xff]   ;;  %vm5632_vm10 = vmmov %vm5629_vm9 }
 0x312   : > { %v1750_v15 = vpop.permute.xlu1 %1749  ;;  %1767 = vrot.lane.b32.xlu0 %v4744_v14, %s5606_s18 }
 0x313   : > { %v2022_v46 = vsel %vm713_vm0, %v1975_v24, %v1750_v15  ;;  %v1636_v24 = vrot.slane %v4420_v33, 1  ;;  %3527 = vmatmul.mubr.msk.bf16.vlgmr.msra.gmra.mrb[4].mxu0 %vm2589_vm11, %v3710_v51 }
 0x314   : > { %1961 = vrot.lane.b32.xlu1 %v4783_v12, %s5609_s21  ;;  %v4796_v57 = vpop.permute.xlu0 %1725  ;;  %v2054_v26 = vsel %vm716_vm2, %v2022_v46, %v4643_v58  ;;  %v1635_v58 = vrot.slane %v4432_v5, 1 }
 0x316   : > { %v1814_v59 = vpop.permute.xlu1 %1813  ;;  %1831 = vrot.lane.b32.xlu0 %v4756_v0, %s5607_s14 }
 0x317   : > { %v2086_v7 = vsel %vm719_vm3, %v2054_v26, %v1814_v59  ;;  %v1700_v26 = vrot.slane %v4443_v61, 2 }
 0x318   : > { %1773 = vrot.lane.b32.xlu1 %v1683_v35, %s5606_s18  ;;  %v4814_v63 = vpop.permute.xlu0 %1729  ;;  %v4819_v35 = vsel %vm1644_vm7, %v1678_v42, %v1679_v28  ;;  %v4833_v28 = vsel %vm1595_vm6, %v1635_v58, %v1636_v24  ;;  %v1981_v24 = vsel %vm709_vm1, %v4260_v22, %v1722_v34 }
 0x31a   : > { %v1846_v4 = vpop.permute.xlu1 %1845  ;;  %1863 = vrot.lane.b32.xlu0 %v4819_v35, %s5608_s16 }
 0x31b   : > { %v2118_v15 = vsel %vm722_vm4, %v2086_v7, %v1846_v4 }
 0x31c   : > { %1837 = vrot.lane.b32.xlu1 %v4626_v13, %s5607_s14  ;;  %v4830_v1 = vpop.permute.xlu0 %1733  ;;  %v3711_v13 = vld [vmem:[%s3969_s26 + $0x10] sm:$0xff]   ;;  %v2150_v51 = vsel %vm725_vm5, %v2118_v15, %v4651_v36  ;;  %v1699_v36 = vrot.slane %v4174_v47, 2 }
 0x31d   : > { %3530 = vmatprep.mubr.msk.bf16.mxu0 %vm2589_vm11, %v3711_v13 }
 0x31e   : > { %v1910_v46 = vpop.permute.xlu1 %1909  ;;  %1927 = vrot.lane.b32.xlu0 %v4833_v28, %s5604_s2  ;;  %3531 = vmatmul.mubr.msk.bf16.gmra.mrb[8].mxu0 %vm2589_vm11, %v3712_v62  ;;  %v4862_v58 = vsel %vm1644_vm7, %v1699_v36, %v1700_v26 }
 0x31f   : > { %v2182_v4 = vsel %vm5625_vm12, %v2150_v51, %v1910_v46  ;;  %v1703_v51 = vrot.slane %v4467_v45, 2 }
 0x320   : > { %1869 = vrot.lane.b32.xlu1 %v4783_v12, %s5608_s16  ;;  %v4845_v17 = vpop.permute.xlu0 %1737 }
 0x322   : > { %v1942_v59 = vpop.permute.xlu1 %1941  ;;  %1843 = vrot.lane.b32.xlu0 %v4507_v3, %s5607_s14  ;;  %v3714_v3 = vld [vmem:[%s3969_s26 + $0x28] sm:$0xff]  }
 0x323   : > { %v2214_v42 = vsel %vm5626_vm13, %v2182_v4, %v1942_v59  ;;  %vm5635_vm13 = vmmov %vm5629_vm9 }
 0x324   : > { %1943 = vrot.lane.b32.xlu1 %v4656_v56, %s5609_s21  ;;  %3492 = vmatprep.mubr.msk.bf16.mxu1 %vm5627_vm14, %v2214_v42  ;;  %v4858_v15 = vpop.permute.xlu0 %1741  ;;  %v3713_v56 = vld [vmem:[%s3969_s26 + $0x20] sm:$0xff]   ;;  %v3715_v42 = vld [vmem:[%s3969_s26 + $0x30] sm:$0xff]  }
 0x325   : > { %3534 = vmatprep.mubr.msk.bf16.mxu0 %vm2589_vm11, %v3713_v56 }
 0x326   : > { %v1754_v7 = vpop.permute.xlu1 %1753  ;;  %1739 = vrot.lane.b32.xlu0 %v4756_v0, %s5605_s11  ;;  %v1702_v0 = vrot.slane %v4184_v54, 2  ;;  %3535 = vmatmul.mubr.msk.bf16.gmra.mrb[12].mxu0 %vm2589_vm11, %v3714_v3  ;;  %v3716_v54 = vld [vmem:[%s3969_s26 + $0x38] sm:$0xff]  }
 0x327   : > { %v2026_v61 = vsel %vm713_vm0, %v1981_v24, %v1754_v7  ;;  %3538 = vmatprep.mubr.msk.bf16.mxu0 %vm2589_vm11, %v3715_v42 }
 0x328   : > { %1965 = vrot.lane.b32.xlu1 %v4862_v58, %s5609_s21  ;;  %v2058_v22 = vsel %vm716_vm2, %v2026_v61, %v4662_v39  ;;  %v1720_v46 = vpop.permute.xlu0 %1719  ;;  %v1704_v45 = vsel %vm1644_vm7, %v1702_v0, %v1703_v51 }
 0x329   : > { %v1978_v62 = vsel %vm709_vm1, %v4583_v30, %v1720_v46  ;;  %v1684_v30 = vrot.slane %v4432_v5, 2 }
 0x32a   : > { %v1818_v34 = vpop.permute.xlu1 %1817  ;;  %1771 = vrot.lane.b32.xlu0 %v4819_v35, %s5606_s18 }
 0x32b   : > { %v2090_v13 = vsel %vm719_vm3, %v2058_v22, %v1818_v34  ;;  %v1642_v22 = vrot.slane %v4430_v49, 1 }
 0x32c   : > { %1947 = vrot.lane.b32.xlu1 %v4699_v60, %s5609_s21  ;;  %v1752_v4 = vpop.permute.xlu0 %1751  ;;  %v1685_v60 = vrot.slane %v4420_v33, 2 }
 0x32d   : > { %v2024_v26 = vsel %vm713_vm0, %v1978_v62, %v1752_v4 }
 0x32e   : > { %v1850_v39 = vpop.permute.xlu1 %1849  ;;  %1835 = vrot.lane.b32.xlu0 %v4833_v28, %s5607_s14  ;;  %v2056_v7 = vsel %vm716_vm2, %v2024_v26, %v4653_v11  ;;  %v1686_v3 = vsel %vm1644_vm7, %v1684_v30, %v1685_v60  ;;  %3539 = vmatmul.mubr.msk.bf16.gmra.mrb[16].mxu0 %vm2589_vm11, %v3716_v54 }
 0x32f   : > { %v2122_v59 = vsel %vm722_vm4, %v2090_v13, %v1850_v39 }
 0x330   : > { %1967 = vrot.lane.b32.xlu1 %v1704_v45, %s5609_s21  ;;  %v2154_v36 = vsel %vm725_vm5, %v2122_v59, %v4670_v32  ;;  %v1816_v61 = vpop.permute.xlu0 %1815  ;;  %v1641_v32 = vrot.slane %v4464_v21, 1 }
 0x331   : > { %v2088_v33 = vsel %vm719_vm3, %v2056_v7, %v1816_v61 }
 0x332   : > { %v1914_v24 = vpop.permute.xlu1 %1913  ;;  %1867 = vrot.lane.b32.xlu0 %v1686_v3, %s5608_s16  ;;  %v1643_v51 = vsel %vm1595_vm6, %v1641_v32, %v1642_v22  ;;  %vm5631_vm6 = vmmov %vm5630_vm8 }
 0x333   : > { %v2186_v56 = vsel %vm5628_vm15, %v2154_v36, %v1914_v24  ;;  %vm5634_vm12 = vmmov %vm5631_vm6 }
 0x334   : > { %1951 = vrot.lane.b32.xlu1 %v4744_v14, %s5609_s21  ;;  %v1848_v11 = vpop.permute.xlu0 %1847  ;;  %v1987_v14 = vsel %vm709_vm1, %v4286_v6, %v4796_v57  ;;  %vm5636_vm14 = vmmov %vm5631_vm6 }
 0x335   : > { %v2120_v13 = vsel %vm722_vm4, %v2088_v33, %v1848_v11  ;;  %vm5637_vm15 = vmmov %vm5629_vm9 }
 0x336   : > { %v1946_v34 = vpop.permute.xlu1 %1945  ;;  %1931 = vrot.lane.b32.xlu0 %v1643_v51, %s5604_s2  ;;  %v2152_v39 = vsel %vm725_vm5, %v2120_v13, %v4664_v50 }
 0x337   : > { %v4908_v46 = vsel %vm5629_vm9, %v2186_v56, %v1946_v34  ;;  %vm5638_vm9 = vcmask 293888  }
 0x338   : > { %1777 = vrot.lane.b32.xlu1 %v4783_v12, %s5606_s18  ;;  %v1912_v62 = vpop.permute.xlu0 %1911 }
 0x339   : > { %v4922_v59 = vsel %vm5630_vm8, %v2152_v39, %v1912_v62  ;;  %vm5639_vm8 = vmmov %vm5638_vm9 }
 0x33a   : > { %v1758_v0 = vpop.permute.xlu1 %1757  ;;  %1875 = vrot.lane.b32.xlu0 %v1704_v45, %s5608_s16 }
 0x33b   : > { %v2030_v4 = vsel %vm713_vm0, %v1987_v14, %v1758_v0 }
 0x33c   : > { %1955 = vrot.lane.b32.xlu1 %v4819_v35, %s5609_s21  ;;  %v2062_v12 = vsel %vm716_vm2, %v2030_v4, %v4676_v37  ;;  %v4929_v6 = vpop.permute.xlu0 %1745 }
 0x33e   : > { %v1822_v42 = vpop.permute.xlu1 %1821  ;;  %1907 = vrot.lane.b32.xlu0 %v4178_v52, %s5598_s0  ;;  %v1691_v52 = vrot.slane %v4430_v49, 2 }
 0x33f   : > { %v2094_v57 = vsel %vm719_vm3, %v2062_v12, %v1822_v42 }
 0x340   : > { %1809 = vrot.lane.b32.xlu1 %v4174_v47, %s5599_s1  ;;  %v1724_v26 = vpop.permute.xlu0 %1723 }
 0x341   : > { %v1984_v60 = vsel %vm709_vm1, %v4288_v18, %v1724_v26 }
 0x342   : > { %v1854_v50 = vpop.permute.xlu1 %1853  ;;  %1743 = vrot.lane.b32.xlu0 %v4833_v28, %s5605_s11  ;;  %v1690_v28 = vrot.slane %v4464_v21, 2 }
 0x343   : > { %v2126_v35 = vsel %vm722_vm4, %v2094_v57, %v1854_v50 }
 0x344   : > { %1959 = vrot.lane.b32.xlu1 %v1686_v3, %s5609_s21  ;;  %v2158_v37 = vsel %vm725_vm5, %v2126_v35, %v4686_v25  ;;  %v1756_v47 = vpop.permute.xlu0 %1755  ;;  %v1692_v7 = vsel %vm1644_vm7, %v1690_v28, %v1691_v52  ;;  %vm5633_vm7 = vmmov %vm5631_vm6  ;;  %v3726_v52 = vld [vmem:[%s5531_s5 + $0x8] sm:$0xff]  }
 0x345   : > { %v2028_v30 = vsel %vm713_vm0, %v1984_v60, %v1756_v47 }
 0x346   : > { %v1918_v45 = vpop.permute.xlu1 %1917  ;;  %1775 = vrot.lane.b32.xlu0 %v1686_v3, %s5606_s18  ;;  %v2060_v25 = vsel %vm716_vm2, %v2028_v30, %v4672_v29 }
 0x347   : > { %v2190_v54 = vsel %vm5631_vm6, %v2158_v37, %v1918_v45  ;;  %vm5640_vm6 = vmmov %vm5632_vm10 }
 0x348   : > { %1841 = vrot.lane.b32.xlu1 %v4489_v31, %s5607_s14  ;;  %v1820_v24 = vpop.permute.xlu0 %1819  ;;  %v1993_v31 = vsel %vm709_vm1, %v4319_v53, %v4814_v63 }
 0x349   : > { %v2092_v49 = vsel %vm719_vm3, %v2060_v25, %v1820_v24  ;;  %v3728_v24 = vld [vmem:[%s5531_s5 + $0x18] sm:$0xff]  }
 0x34a   : > { %v1950_v36 = vpop.permute.xlu1 %1949  ;;  %1839 = vrot.lane.b32.xlu0 %v1643_v51, %s5607_s14 }
 0x34b   : > { %v4954_v18 = vsel %vm5632_vm10, %v2190_v54, %v1950_v36  ;;  %v3725_v54 = vld [vmem:[%s5531_s5] sm:$0xff]   ;;  %vm5641_vm10 = vmmov %vm5639_vm8 }
 0x34c   : > { %1963 = vrot.lane.b32.xlu1 %v1692_v7, %s5609_s21  ;;  %v1852_v56 = vpop.permute.xlu0 %1851  ;;  %3558 = vmatprep.subr.bf16.mxu0 %v3725_v54 }
 0x34d   : > { %v2124_v33 = vsel %vm722_vm4, %v2092_v49, %v1852_v56  ;;  %3559 = vmatpush3.bf16.msra.mxu0 %v3725_v54 }
 0x34e   : > { %v1762_v61 = vpop.permute.xlu1 %1761  ;;  %1871 = vrot.lane.b32.xlu0 %v1692_v7, %s5608_s16  ;;  %v2156_v32 = vsel %vm725_vm5, %v2124_v33, %v4678_v55  ;;  %3560 = vmatprep.subr.bf16.mxu0 %v3726_v52 }
 0x34f   : > { %v2034_v29 = vsel %vm713_vm0, %v1993_v31, %v1762_v61  ;;  %v3729_v31 = vld [vmem:[%s5531_s5 + $0x20] sm:$0xff]  }
 0x350   : > { %1873 = vrot.lane.b32.xlu1 %v4862_v58, %s5608_s16  ;;  %v2066_v3 = vsel %vm716_vm2, %v2034_v29, %v4694_v48  ;;  %v1916_v34 = vpop.permute.xlu0 %1915  ;;  %v3730_v29 = vld [vmem:[%s5531_s5 + $0x28] sm:$0xff]   ;;  %s3415_s16 = sshll.u32 %s3937_s13, 12 }
 0x351   : > { %v4974_v63 = vsel %vm5633_vm7, %v2156_v32, %v1916_v34  ;;  %3561 = vmatpush3.bf16.msra.mxu0 %v3726_v52  ;;  %vm5642_vm7 = vmmov %vm5639_vm8  ;;  %s5404_s27 = scalar_lea.hbm %s5534_s8, %s3415_s16 }
 0x352   : > { %v1826_v22 = vpop.permute.xlu1 %1825  ;;  %1747 = vrot.lane.b32.xlu0 %v1643_v51, %s5605_s11 }
 0x353   : > { %v2098_v53 = vsel %vm719_vm3, %v2066_v3, %v1826_v22 }
 0x354   : > { %1905 = vrot.lane.b32.xlu1 %v4168_v44, %s5598_s0  ;;  %v1728_v11 = vpop.permute.xlu0 %1727 }
 0x355   : > { %v1990_v14 = vsel %vm709_vm1, %v4306_v38, %v1728_v11 }
 0x356   : > { %v1858_v58 = vpop.permute.xlu1 %1857  ;;  %1779 = vrot.lane.b32.xlu0 %v1692_v7, %s5606_s18 }
 0x357   : > { %v2130_v13 = vsel %vm722_vm4, %v2098_v53, %v1858_v58 }
 0x358   : > { %1937 = vrot.lane.b32.xlu1 %v4199_v2, %s5604_s2  ;;  %v2162_v55 = vsel %vm725_vm5, %v2130_v13, %v4706_v19  ;;  %v1760_v0 = vpop.permute.xlu0 %1759 }
 0x359   : > { %v2032_v51 = vsel %vm713_vm0, %v1990_v14, %v1760_v0 }
 0x35a   : > { %v1922_v48 = vpop.permute.xlu1 %1921  ;;  %1939 = vrot.lane.b32.xlu0 %v4207_v9, %s5604_s2  ;;  %v2064_v39 = vsel %vm716_vm2, %v2032_v51, %v4688_v43  ;;  %s5251_s2 = sand.u32 1, %s3819_s10  }
 0x35b   : > { %v2194_v44 = vsel %vm5634_vm12, %v2162_v55, %v1922_v48  ;;  %s3317_s11 = sshll.u32 %s5251_s2, 8  ;;  %s3173_s25 = scalar_lea.sflag [#allocation3], %s5251_s2 }
 0x35c   : > { %1969 = vrot.lane.b32.xlu1 %v4210_v10, %s5609_s21  ;;  %v1824_v19 = vpop.permute.xlu0 %1823  ;;  %v1999_v10 = vsel %vm709_vm1, %v4343_v27, %v4830_v1  ;;  %s5264_s14 = scalar_lea.vmem [#allocation2], %s3317_s11 }
 0x35d   : > { %v2096_v38 = vsel %vm719_vm3, %v2064_v39, %v1824_v19  ;;  %s3191_s28 = sshll.u32 %s5264_s14, 4  ;;  %s5407_s28 = int_to_ptr.vmem [resolvable:$true] %s3191_s28 }
 0x35e   : > { %v1954_v2 = vpop.permute.xlu1 %1953  ;;  %1971 = vrot.lane.b32.xlu0 %v4214_v16, %s5609_s21  ;;  %s3733_s23 = scalar_lea.vmem %s5407_s28, 4096  ;;  %p3740_p0 = scmp.lt.s32.totalorder %s5407_s28, %s3738_s29 }
 0x35f   : > { %v4996_v62 = vsel %vm5635_vm13, %v2194_v44, %v1954_v2  ;;  %vm5644_vm13 = vmmov %vm5640_vm6  ;;  %p3734_p11 = scmp.ne.s32.totalorder %s5407_s28, %s3733_s23  ;;  %p3741_p1 = scmp.lt.s32.totalorder %s3739_s15, %s3733_s23 }
 0x360   : > { %v1856_v12 = vpop.permute.xlu0 %1855 }
 0x361   : > { %v5006_v42 = vsel %vm722_vm4, %v2096_v38, %v1856_v12  ;;  %p3735_p12 = pnand %p3734_p11, %p3954_p5  ;;  %p3742_p2 = por %p3741_p1, %p3740_p0 }
 0x362   : > { %v1766_v4 = vpop.permute.xlu1 %1765 }
 0x363   : > { %v2038_v9 = vsel %vm713_vm0, %v1999_v10, %v1766_v4  ;;  %p3736_p13 = pneg %p3735_p12 }
 0x364   : > { %v2070_v43 = vsel %vm716_vm2, %v2038_v9, %v4714_v40  ;;  %v5010_v50 = vpop.permute.xlu0 %1919 }
 0x365   : > { %p3743_p3 = pnand %p3742_p2, %p3736_p13 }
 0x366   : > { %v1830_v57 = vpop.permute.xlu1 %1829 }
 0x367   : > { %v2102_v26 = vsel %vm719_vm3, %v2070_v43, %v1830_v57 }
 0x368   : > { %v1732_v35 = vpop.permute.xlu0 %1731 }
 0x36a   : > { %v1862_v16 = vpop.permute.xlu1 %1861 }
 0x36b   : > { %v2134_v37 = vsel %vm722_vm4, %v2102_v26, %v1862_v16  ;;  %v5649_v16 = vld [vmem:[#allocation12_spill] sm:$0xff] }
 0x36c   : > { %v2166_v27 = vsel %vm725_vm5, %v2134_v37, %v4720_v8  ;;  %v1764_v45 = vpop.permute.xlu0 %1763  ;;  %v3727_v8 = vld [vmem:[%s5531_s5 + $0x10] sm:$0xff]   ;;  %v5650_v37 = vld [vmem:[#allocation19_spill] sm:$0xff] }
 0x36d   : > { %3562 = vmatprep.subr.bf16.mxu0 %v3727_v8 }
 0x36e   : > { %v1926_v1 = vpop.permute.xlu1 %1925  ;;  %3563 = vmatpush3.bf16.msra.mxu0 %v3727_v8 }
 0x36f   : > { %v5017_v60 = vsel %vm5636_vm14, %v2166_v27, %v1926_v1  ;;  %3564 = vmatprep.subr.bf16.mxu0 %v3728_v24  ;;  %vm5646_vm14 = vmmov %vm5642_vm7 }
 0x370   : > { %v1828_v40 = vpop.permute.xlu0 %1827 }
 0x372   : > { %v5019_v47 = vpop.permute.xlu1 %1957  ;;  %3565 = vmatpush3.bf16.msra.mxu0 %v3728_v24  ;;  %v5655_v24 = vld [vmem:[#allocation21_spill] sm:$0xff] }
 0x373   : > { %3566 = vmatprep.subr.bf16.mxu0 %v3729_v31 }
 0x374   : > { %v1860_v28 = vpop.permute.xlu0 %1859 }
 0x376   : > { %v5027_v30 = vpop.permute.xlu1 %1769  ;;  %3567 = vmatpush3.bf16.msra.mxu0 %v3729_v31 }
 0x377   : > { %3568 = vmatprep.subr.bf16.mxu0 %v3730_v29 }
 0x378   : > { %v1924_v25 = vpop.permute.xlu0 %1923 }
 0x37a   : > { %v5032_v36 = vpop.permute.xlu1 %1833  ;;  %3569 = vmatpush3.bf16.msra.mxu0 %v3730_v29 }
 0x37c   : > { %v5039_v49 = vpop.permute.xlu0 %1811 }
 0x37e   : > { %v5037_v7 = vpop.permute.xlu1 %1865 }
 0x380   : > { %v1736_v56 = vpop.permute.xlu0 %1735 }
 0x382   : > { %v5044_v61 = vpop.permute.xlu1 %1929 }
 0x384   : > { %v1768_v3 = vpop.permute.xlu0 %1767 }
 0x386   : > { %v5049_v33 = vpop.permute.xlu1 %1961 }
 0x388   : > { %v1832_v32 = vpop.permute.xlu0 %1831 }
 0x38a   : > { %v1774_v22 = vpop.permute.xlu1 %1773 }
 0x38c   : > { %v1864_v53 = vpop.permute.xlu0 %1863 }
 0x38e   : > { %v5051_v34 = vpop.permute.xlu1 %1837 }
 0x390   : > { %v1928_v11 = vpop.permute.xlu0 %1927 }
 0x392   : > { %v5053_v58 = vpop.permute.xlu1 %1869 }
 0x394   : > { %v5055_v55 = vpop.permute.xlu0 %1843 }
 0x396   : > { %v1944_v13 = vpop.permute.xlu1 %1943 }
 0x397   : > { %v2216_v48 = vsel %vm5637_vm15, %v4922_v59, %v1944_v13  ;;  %vm5647_vm15 = vmmov %vm5642_vm7 }
 0x398   : > { %3493 = vmatmul.mubr.msk.bf16.vlgmr.msra.gmra.mrb[0].mxu1 %vm5638_vm9, %v2216_v48  ;;  %v1740_v0 = vpop.permute.xlu0 %1739  ;;  %vm5651_vm9 = vmmov %vm5634_vm12 }
 0x399   : > { %3496 = vmatprep.mubr.msk.bf16.mxu1 %vm5639_vm8, %v4908_v46  ;;  %3607 = vmatpush3.bf16.msra.mxu1 %v4799_v41  ;;  %v1996_v46 = vsel %vm709_vm1, %v4335_v23, %v1732_v35  ;;  %v5643_v41 = vld [vmem:[#allocation17_spill] sm:$0xff]  ;;  %v2005_v35 = vsel %vm709_vm1, %v5649_v16, %v4845_v17  ;;  %vm5652_vm8 = vmmov %vm5640_vm6  ;;  %v5653_v17 = vld [vmem:[#allocation20_spill] sm:$0xff] }
 0x39a   : > { %v5063_v14 = vpop.permute.xlu1 %1965  ;;  %v2160_v19 = vsel %vm725_vm5, %v5006_v42, %v5643_v41  ;;  %v2036_v38 = vsel %vm713_vm0, %v1996_v46, %v1764_v45  ;;  %v5670_v16 = vld [vmem:[#allocation27_spill] sm:$0xff] }
 0x39c   : > { %v1772_v51 = vpop.permute.xlu0 %1771 }
 0x39e   : > { %v1948_v44 = vpop.permute.xlu1 %1947 }
 0x39f   : > { %v2220_v2 = vsel %vm5640_vm6, %v4974_v63, %v1948_v44  ;;  %v2192_v63 = vsel %vm5634_vm12, %v2160_v19, %v5010_v50  ;;  %v5648_v50 = vld [vmem:[#allocation11_spill] sm:$0xff]  ;;  %v5657_v44 = vld [vmem:[#allocation22_spill] sm:$0xff]  ;;  %vm5659_vm12 = vmmov %vm5651_vm9 }
 0x3a0   : > { %3497 = vmatmul.mubr.msk.bf16.gmra.mrb[4].mxu1 %vm5641_vm10, %v2220_v2  ;;  %v1836_v39 = vpop.permute.xlu0 %1835  ;;  %v2002_v26 = vsel %vm709_vm1, %v5648_v50, %v1736_v56  ;;  %vm5654_vm10 = vmmov %vm5642_vm7  ;;  %v5658_v2 = vld [vmem:[#allocation23_spill] sm:$0xff]  ;;  %v5661_v19 = vld [vmem:[#allocation25_spill] sm:$0xff] }
 0x3a1   : > { %3500 = vmatprep.mubr.msk.bf16.mxu1 %vm5642_vm7, %v4954_v18  ;;  %v5645_v18 = vld [vmem:[#allocation18_spill] sm:$0xff]  ;;  %v2040_v1 = vsel %vm713_vm0, %v2002_v26, %v1768_v3 }
 0x3a2   : > { %v5070_v59 = vpop.permute.xlu1 %1967  ;;  %v2068_v9 = vsel %vm716_vm2, %v2036_v38, %v5645_v18  ;;  %v2072_v8 = vsel %vm716_vm2, %v2040_v1, %v5653_v17 }
 0x3a3   : > { %v2100_v23 = vsel %vm719_vm3, %v2068_v9, %v1828_v40 }
 0x3a4   : > { %v1868_v4 = vpop.permute.xlu0 %1867  ;;  %v2132_v42 = vsel %vm722_vm4, %v2100_v23, %v1860_v28  ;;  %v2230_v28 = vsel %vm5640_vm6, %v5017_v60, %v5019_v47  ;;  %v5656_v60 = vld [vmem:[#allocation13_spill] sm:$0xff] }
 0x3a5   : > { %v2164_v27 = vsel %vm725_vm5, %v2132_v42, %v5650_v37  ;;  %v2011_v47 = vsel %vm709_vm1, %v5656_v60, %v4858_v15 }
 0x3a6   : > { %v1952_v10 = vpop.permute.xlu1 %1951  ;;  %v2196_v45 = vsel %vm5651_vm9, %v2164_v27, %v1924_v25  ;;  %v2046_v48 = vsel %vm713_vm0, %v2011_v47, %v1774_v22 }
 0x3a7   : > { %v2224_v12 = vsel %vm5644_vm13, %v2192_v63, %v1952_v10  ;;  %vm5660_vm13 = vmmov %vm5651_vm9  ;;  %v2078_v22 = vsel %vm716_vm2, %v2046_v48, %v5661_v19  ;;  %v5664_v63 = vld [vmem:[#allocation24_spill] sm:$0xff]  ;;  %v3719_v19 = vld [vmem:[%s3969_s26 + $0x50] sm:$0xff]  }
 0x3a8   : > { %3501 = vmatmul.mubr.msk.bf16.gmra.mrb[8].mxu1 %vm5646_vm14, %v2224_v12  ;;  %v1932_v57 = vpop.permute.xlu0 %1931  ;;  %vm5662_vm14 = vmmov %vm5640_vm6 }
 0x3a9   : > { %3504 = vmatprep.mubr.msk.bf16.mxu1 %vm5647_vm15, %v4996_v62  ;;  %v2042_v62 = vsel %vm713_vm0, %v2005_v35, %v5027_v30  ;;  %v2104_v30 = vsel %vm719_vm3, %v2072_v8, %v1832_v32  ;;  %v2008_v32 = vsel %vm709_vm1, %v4393_v20, %v1740_v0  ;;  %vm5663_vm15 = vmmov %vm5640_vm6  ;;  %v5678_v8 = vld [vmem:[#allocation29_spill] sm:$0xff] }
 0x3aa   : > { %v5088_v43 = vpop.permute.xlu1 %1777  ;;  %v2074_v31 = vsel %vm716_vm2, %v2042_v62, %v5655_v24  ;;  %v2136_v56 = vsel %vm722_vm4, %v2104_v30, %v1864_v53  ;;  %v2044_v53 = vsel %vm713_vm0, %v2008_v32, %v1772_v51  ;;  %v2110_v51 = vsel %vm719_vm3, %v2078_v22, %v5051_v34  ;;  %vm5665_vm9 = vmmov %vm5642_vm7  ;;  %v5668_v34 = vld [vmem:[#allocation26_spill] sm:$0xff]  ;;  %v3721_v22 = vld [vmem:[%s3969_s26 + $0x60] sm:$0xff]  }
 0x3ab   : > { %v2106_v25 = vsel %vm719_vm3, %v2074_v31, %v5032_v36  ;;  %v2168_v36 = vsel %vm725_vm5, %v2136_v56, %v5657_v44  ;;  %v2076_v10 = vsel %vm716_vm2, %v2044_v53, %v5664_v63  ;;  %vm5669_vm6 = vmmov %vm5659_vm12  ;;  %v5681_v30 = vld [vmem:[#allocation14_spill] sm:$0xff] }
 0x3ac   : > { %v5101_v54 = vpop.permute.xlu0 %1875  ;;  %v2138_v3 = vsel %vm722_vm4, %v2106_v25, %v5037_v7  ;;  %v2200_v15 = vsel %vm5659_vm12, %v2168_v36, %v1928_v11  ;;  %v2108_v11 = vsel %vm719_vm3, %v2076_v10, %v1836_v39  ;;  %v2017_v25 = vsel %vm709_vm1, %v5681_v30, %v4929_v6  ;;  %v3731_v10 = vld [vmem:[%s5531_s5 + $0x30] sm:$0xff]  }
 0x3ad   : > { %v2170_v46 = vsel %vm725_vm5, %v2138_v3, %v5658_v2  ;;  %v2140_v12 = vsel %vm722_vm4, %v2108_v11, %v1868_v4  ;;  %v2050_v56 = vsel %vm713_vm0, %v2017_v25, %v5088_v43  ;;  %3570 = vmatprep.subr.bf16.mxu0 %v3731_v10 }
 0x3ae   : > { %v1956_v40 = vpop.permute.xlu1 %1955  ;;  %v2202_v7 = vsel %vm5660_vm13, %v2170_v46, %v5044_v61  ;;  %v2142_v61 = vsel %vm722_vm4, %v2110_v51, %v5053_v58  ;;  %v2172_v42 = vsel %vm725_vm5, %v2140_v12, %v5668_v34  ;;  %v3724_v51 = vld [vmem:[%s3969_s26 + $0x78] sm:$0xff]   ;;  %3571 = vmatpush3.bf16.msra.mxu0 %v3731_v10 }
 0x3af   : > { %v2228_v52 = vsel %vm5652_vm8, %v2196_v45, %v1956_v40  ;;  %v2234_v0 = vsel %vm5663_vm15, %v2202_v7, %v5049_v33  ;;  %vm5666_vm8 = vmmov %vm5642_vm7  ;;  %v5667_v33 = vld [vmem:[#allocation15_spill] sm:$0xff]  ;;  %v2204_v50 = vsel %vm5669_vm6, %v2172_v42, %v1932_v57  ;;  %v5676_v57 = vld [vmem:[#allocation28_spill] sm:$0xff] }
 0x3b0   : > { %3505 = vmatmul.mubr.msk.bf16.gmra.mrb[12].mxu1 %vm5654_vm10, %v2228_v52  ;;  %v5122_v13 = vpop.permute.xlu0 %1907  ;;  %v2174_v23 = vsel %vm725_vm5, %v2142_v61, %v5667_v33  ;;  %vm5671_vm10 = vmmov %vm5669_vm6  ;;  %v5677_v52 = vld [vmem:[#allocation16_spill] sm:$0xff]  ;;  %v3732_v12 = vld [vmem:[%s5531_s5 + $0x38] sm:$0xff]  }
 0x3b1   : > { %3508 = vmatprep.mubr.msk.bf16.mxu1 %vm5642_vm7, %v2230_v28  ;;  %v2206_v39 = vsel %vm5671_vm10, %v2174_v23, %v5670_v16  ;;  %vm5672_vm7 = vmmov %vm5662_vm14  ;;  %3572 = vmatprep.subr.bf16.mxu0 %v3732_v12 }
 0x3b2   : > { %v1810_v29 = vpop.permute.xlu1 %1809  ;;  %vm5673_vm12 = vmmov %vm5672_vm7  ;;  %3573 = vmatpush3.bf16.msra.mxu0 %v3732_v12 }
 0x3b3   : > { %v2238_v27 = vsel %vm5673_vm12, %v2206_v39, %v5063_v14  ;;  %vm5674_vm13 = vmmov %vm5666_vm8  ;;  %v2082_v60 = vsel %vm716_vm2, %v2050_v56, %v1810_v29 }
 0x3b4   : > { %v1744_v38 = vpop.permute.xlu0 %1743  ;;  %vm5679_vm15 = vmmov %vm5669_vm6 }
 0x3b5   : > { %v2014_v26 = vsel %vm709_vm1, %v4432_v5, %v1744_v38  ;;  %v3722_v38 = vld [vmem:[%s3969_s26 + $0x68] sm:$0xff]  }
 0x3b6   : > { %v1960_v41 = vpop.permute.xlu1 %1959 }
 0x3b7   : > { %v2232_v20 = vsel %vm5662_vm14, %v2200_v15, %v1960_v41  ;;  %vm5675_vm14 = vmmov %vm5666_vm8 }
 0x3b8   : > { %3509 = vmatmul.mubr.msk.bf16.gmra.mrb[16].mxu1 %vm5665_vm9, %v2232_v20  ;;  %v1776_v9 = vpop.permute.xlu0 %1775  ;;  %vm5680_vm9 = vmmov %vm5672_vm7  ;;  %v3723_v20 = vld [vmem:[%s3969_s26 + $0x70] sm:$0xff]  }
 0x3b9   : > { %3512 = vmatprep.mubr.msk.bf16.mxu1 %vm5666_vm8, %v2234_v0  ;;  %v2048_v35 = vsel %vm713_vm0, %v2014_v26, %v1776_v9 }
 0x3ba   : > { %v1842_v18 = vpop.permute.xlu1 %1841  ;;  %v2080_v1 = vsel %vm716_vm2, %v2048_v35, %v5676_v57 }
 0x3bb   : > { %v2114_v3 = vsel %vm719_vm3, %v2082_v60, %v1842_v18 }
 0x3bc   : > { %v1840_v4 = vpop.permute.xlu0 %1839 }
 0x3bd   : > { %v2112_v62 = vsel %vm719_vm3, %v2080_v1, %v1840_v4  ;;  %v5243_v4 = vld [vmem:[%s5533_s7] ss:$0 sm:$0xff] }
 0x3be   : > { %v1964_v58 = vpop.permute.xlu1 %1963 }
 0x3bf   : > { %v2236_v37 = vsel %vm5672_vm7, %v2204_v50, %v1964_v58 }
 0x3c0   : > { %3513 = vmatmul.mubr.msk.bf16.gmra.mrb[20].mxu1 %vm5674_vm13, %v2236_v37  ;;  %v1872_v45 = vpop.permute.xlu0 %1871  ;;  %v5248_v37 = vld [vmem:[%s5532_s6] ss:$0 sm:$0xff] }
 0x3c1   : > { %3516 = vmatprep.mubr.msk.bf16.mxu1 %vm5675_vm14, %v2238_v27  ;;  %v2144_v40 = vsel %vm722_vm4, %v2112_v62, %v1872_v45 }
 0x3c2   : > { %v1874_v5 = vpop.permute.xlu1 %1873  ;;  %v2176_v28 = vsel %vm725_vm5, %v2144_v40, %v5677_v52 }
 0x3c3   : > { %v2208_v14 = vsel %vm5679_vm15, %v2176_v28, %v5678_v8 }
 0x3c4   : > { %v1748_v24 = vpop.permute.xlu0 %1747  ;;  %v2240_v31 = vsel %vm5680_vm9, %v2208_v14, %v5070_v59  ;;  %v2146_v59 = vsel %vm722_vm4, %v2114_v3, %v1874_v5 }
 0x3c5   : > { %v2020_v48 = vsel %vm709_vm1, %v4464_v21, %v1748_v24  ;;  %vm5683_vm1 = vmmov %vm5666_vm8 }
 0x3c6   : > { %v1906_v17 = vpop.permute.xlu1 %1905  ;;  %vm5686_vm10 = vmmov %vm5683_vm1 }
 0x3c7   : > { %v2178_v6 = vsel %vm725_vm5, %v2146_v59, %v1906_v17 }
 0x3c8   : > { %3517 = vmatmul.mubr.msk.bf16.gmra.mrb[24].mxu1 %vm5666_vm8, %v2240_v31  ;;  %v1780_v32 = vpop.permute.xlu0 %1779 }
 0x3c9   : > { %v2052_v44 = vsel %vm713_vm0, %v2020_v48, %v1780_v32  ;;  %vm5682_vm0 = vmmov %vm5672_vm7 }
 0x3ca   : > { %v1938_v47 = vpop.permute.xlu1 %1937  ;;  %v2084_v43 = vsel %vm716_vm2, %v2052_v44, %v5039_v49  ;;  %v3717_v49 = vld [vmem:[%s3969_s26 + $0x40] sm:$0xff]   ;;  %vm5684_vm2 = vmmov %vm5669_vm6 }
 0x3cb   : > { %v2116_v29 = vsel %vm719_vm3, %v2084_v43, %v5055_v55  ;;  %v2210_v36 = vsel %vm5669_vm6, %v2178_v6, %v1938_v47  ;;  %vm5685_vm3 = vmmov %vm5682_vm0 }
 0x3cc   : > { %v2148_v21 = vsel %vm722_vm4, %v2116_v29, %v5101_v54  ;;  %v1940_v2 = vpop.permute.xlu0 %1939  ;;  %v3718_v54 = vld [vmem:[%s3969_s26 + $0x48] sm:$0xff]  }
 0x3cd   : > { %v2180_v15 = vsel %vm725_vm5, %v2148_v21, %v5122_v13  ;;  %v3720_v13 = vld [vmem:[%s3969_s26 + $0x58] sm:$0xff]  }
 0x3ce   : > { %v1970_v53 = vpop.permute.xlu1 %1969  ;;  %v2212_v55 = vsel %vm5684_vm2, %v2180_v15, %v1940_v2 }
 0x3cf   : > { %v2242_v46 = vsel %vm5682_vm0, %v2210_v36, %v1970_v53 }
 0x3d0   : > { %3520 = vmatprep.mubr.msk.bf16.mxu1 %vm5683_vm1, %v2242_v46  ;;  %v1972_v41 = vpop.permute.xlu0 %1971 }
 0x3d1   : > { %v2244_v7 = vsel %vm5685_vm3, %v2212_v55, %v1972_v41 }
 0x3d2   : > { %3521 = vmatmul.mubr.msk.bf16.gmra.mrb[28].mxu1 %vm5686_vm10, %v2244_v7 }
 0x3d3   : > { %3542 = vmatprep.mubr.msk.bf16.mxu1 %vm2589_vm11, %v3717_v49 }
 0x3da   : > { %3543 = vmatmul.mubr.msk.bf16.vlgmr.msra.gmra.mrb[32].mxu1 %vm2589_vm11, %v3718_v54 }
 0x3db   : > { %3546 = vmatprep.mubr.msk.bf16.mxu1 %vm2589_vm11, %v3719_v19 }
 0x3e2   : > { %3547 = vmatmul.mubr.msk.bf16.gmra.mrb[36].mxu1 %vm2589_vm11, %v3720_v13 }
 0x3e3   : > { %3550 = vmatprep.mubr.msk.bf16.mxu1 %vm2589_vm11, %v3721_v22 }
 0x3e6   : > { %v3528_v0 = vpop.f32.mrb[4].mxu0 }
 0x3e7   : > { %v2676_v63 = vpop.f32.mrb[5].mxu0  ;;  %v2685_v27 = vadd.f32 %v3528_v0, %v5243_v4 }
 0x3e8   : > { %v3529_v61 = vpop.f32.mrb[6].mxu0  ;;  %v2677_v1 = vadd.f32 %v5243_v4, %v2676_v63 }
 0x3e9   : > { %v2679_v11 = vpop.f32.mrb[7].mxu0  ;;  %v2688_v45 = vadd.f32 %v3529_v61, %v5243_v4 }
 0x3ea   : > { %3551 = vmatmul.mubr.msk.bf16.gmra.mrb[40].mxu1 %vm2589_vm11, %v3722_v38  ;;  %v2680_v28 = vadd.f32 %v5243_v4, %v2679_v11 }
 0x3eb   : > { %3554 = vmatprep.mubr.msk.bf16.mxu1 %vm2589_vm11, %v3723_v20 }
 0x3f1   : > { %v3532_v18 = vpop.f32.mrb[8].mxu0 }
 0x3f2   : > { %3555 = vmatmul.mubr.msk.bf16.gmra.mrb[44].mxu1 %vm2589_vm11, %v3724_v51  ;;  %v2692_v9 = vpop.f32.mrb[9].mxu0  ;;  %v2701_v32 = vadd.f32 %v3532_v18, %v5243_v4 }
 0x3f3   : > { %v3533_v33 = vpop.f32.mrb[10].mxu0  ;;  %v2693_v6 = vadd.f32 %v5243_v4, %v2692_v9 }
 0x3f4   : > { %v2695_v23 = vpop.f32.mrb[11].mxu0  ;;  %v2704_v36 = vadd.f32 %v3533_v33, %v5243_v4 }
 0x3f5   : > { %v2696_v2 = vadd.f32 %v5243_v4, %v2695_v23 }
 0x3f9   : > { %v5224_v34 = vpop.f32.mrb[12].mxu0 }
 0x3fa   : > { %v5226_v42 = vpop.f32.mrb[13].mxu0  ;;  %v2717_v0 = vadd.f32 %v5224_v34, %v5243_v4 }
 0x3fb   : > { %v5228_v50 = vpop.f32.mrb[14].mxu0  ;;  %v2709_v10 = vadd.f32 %v5243_v4, %v5226_v42 }
 0x3fc   : > { %v5230_v26 = vpop.f32.mrb[15].mxu0  ;;  %v2720_v12 = vadd.f32 %v5228_v50, %v5243_v4 }
 0x3fd   : > { %v2712_v33 = vadd.f32 %v5243_v4, %v5230_v26 }
 0x401   : > { %v5232_v58 = vpop.f32.mrb[16].mxu0 }
 0x402   : > { %v5234_v16 = vpop.f32.mrb[17].mxu0  ;;  %v2733_v26 = vadd.f32 %v5232_v58, %v5243_v4 }
 0x403   : > { %v5236_v39 = vpop.f32.mrb[18].mxu0 }
 0x404   : > { %v5238_v35 = vpop.f32.mrb[19].mxu0 }
 0x46b   : > { %v3494_v57 = vpop.f32.mrb[0].mxu1 }
 0x46c   : > { %v2351_v5 = vadd.f32 %v3494_v57, %v5248_v37  ;;  %v2342_v62 = vpop.f32.mrb[1].mxu1 }
 0x46d   : > { %v2343_v40 = vadd.f32 %v5248_v37, %v2342_v62  ;;  %v3495_v52 = vpop.f32.mrb[2].mxu1 }
 0x46e   : > { %v2805_v17 = vadd.f32 %v2685_v27, %v2351_v5  ;;  %v2354_v8 = vadd.f32 %v3495_v52, %v5248_v37  ;;  %v2345_v14 = vpop.f32.mrb[3].mxu1 }
 0x46f   : > { %v2803_v24 = vadd.f32 %v2677_v1, %v2343_v40  ;;  %v2346_v31 = vadd.f32 %v5248_v37, %v2345_v14 }
 0x470   : > { %v2837_v30 = vmax.f32 %v2805_v17, 0.0  ;;  %v2900_v25 = vpack.c.bf16 %v2354_v8, %v2351_v5  ;;  %v2806_v56 = vadd.f32 %v2688_v45, %v2354_v8  ;;  %v2725_v8 = vadd.f32 %v5243_v4, %v5234_v16 }
 0x471   : > { %v2835_v60 = vmax.f32 %v2803_v24, 0.0  ;;  %v2899_v47 = vpack.c.bf16 %v2346_v31, %v2343_v40  ;;  %v2804_v3 = vadd.f32 %v2680_v28, %v2346_v31  ;;  %v2736_v31 = vadd.f32 %v5236_v39, %v5243_v4 }
 0x472   : > { %2869 = vst [vmem:[%s5264_s14 + $0x10] sm:$0xff] %v2837_v30  ;;  %v2838_v48 = vmax.f32 %v2806_v56, 0.0 }
 0x473   : > { %2867 = vst [vmem:[%s5264_s14] sm:$0xff] %v2835_v60  ;;  %v2836_v59 = vmax.f32 %v2804_v3, 0.0  ;;  %v3498_v44 = vpop.f32.mrb[4].mxu1  ;;  %3574 = vmatprep.mubr.bf16.mxu0 %v2899_v47 }
 0x474   : > { %2870 = vst [vmem:[%s5264_s14 + $0x18] sm:$0xff] %v2838_v48  ;;  %v2367_v43 = vadd.f32 %v3498_v44, %v5248_v37  ;;  %v2358_v29 = vpop.f32.mrb[5].mxu1  ;;  %3575 = vmatmul.mubr.bf16.vlgmr.msra.gmra.mrb[20].mxu0 %v2900_v25  ;;  %v2728_v25 = vadd.f32 %v5243_v4, %v5238_v35 }
 0x475   : > { %2868 = vst [vmem:[%s5264_s14 + $0x8] sm:$0xff] %v2836_v59  ;;  %v2359_v53 = vadd.f32 %v5248_v37, %v2358_v29  ;;  %v3499_v21 = vpop.f32.mrb[6].mxu1 }
 0x476   : > { %v2809_v46 = vadd.f32 %v2701_v32, %v2367_v43  ;;  %v2370_v15 = vadd.f32 %v3499_v21, %v5248_v37  ;;  %v2361_v49 = vpop.f32.mrb[7].mxu1 }
 0x477   : > { %v2807_v55 = vadd.f32 %v2693_v6, %v2359_v53  ;;  %v2362_v41 = vadd.f32 %v5248_v37, %v2361_v49 }
 0x478   : > { %v2841_v7 = vmax.f32 %v2809_v46, 0.0  ;;  %v2902_v54 = vpack.c.bf16 %v2370_v15, %v2367_v43  ;;  %v2810_v19 = vadd.f32 %v2704_v36, %v2370_v15 }
 0x479   : > { %v2839_v13 = vmax.f32 %v2807_v55, 0.0  ;;  %v2901_v22 = vpack.c.bf16 %v2362_v41, %v2359_v53  ;;  %v2808_v38 = vadd.f32 %v2696_v2, %v2362_v41 }
 0x47a   : > { %2873 = vst [vmem:[%s5264_s14 + $0x30] sm:$0xff] %v2841_v7  ;;  %v2842_v20 = vmax.f32 %v2810_v19, 0.0 }
 0x47b   : > { %2871 = vst [vmem:[%s5264_s14 + $0x20] sm:$0xff] %v2839_v13  ;;  %v2840_v51 = vmax.f32 %v2808_v38, 0.0  ;;  %v3502_v63 = vpop.f32.mrb[8].mxu1  ;;  %3578 = vmatprep.mubr.bf16.mxu0 %v2901_v22 }
 0x47c   : > { %2874 = vst [vmem:[%s5264_s14 + $0x38] sm:$0xff] %v2842_v20  ;;  %v2383_v61 = vadd.f32 %v3502_v63, %v5248_v37  ;;  %v2374_v11 = vpop.f32.mrb[9].mxu1  ;;  %3579 = vmatmul.mubr.bf16.gmra.mrb[24].mxu0 %v2902_v54 }
 0x47d   : > { %2872 = vst [vmem:[%s5264_s14 + $0x28] sm:$0xff] %v2840_v51  ;;  %v2375_v18 = vadd.f32 %v5248_v37, %v2374_v11  ;;  %v3503_v9 = vpop.f32.mrb[10].mxu1 }
 0x47e   : > { %v2813_v23 = vadd.f32 %v2717_v0, %v2383_v61  ;;  %v2386_v34 = vadd.f32 %v3503_v9, %v5248_v37  ;;  %v2377_v42 = vpop.f32.mrb[11].mxu1 }
 0x47f   : > { %v2811_v27 = vadd.f32 %v2709_v10, %v2375_v18  ;;  %v2378_v57 = vadd.f32 %v5248_v37, %v2377_v42 }
 0x480   : > { %v2845_v1 = vmax.f32 %v2813_v23, 0.0  ;;  %v2904_v5 = vpack.c.bf16 %v2386_v34, %v2383_v61  ;;  %v2814_v50 = vadd.f32 %v2720_v12, %v2386_v34 }
 0x481   : > { %v2843_v62 = vmax.f32 %v2811_v27, 0.0  ;;  %v2903_v45 = vpack.c.bf16 %v2378_v57, %v2375_v18  ;;  %v2812_v40 = vadd.f32 %v2712_v33, %v2378_v57 }
 0x482   : > { %2877 = vst [vmem:[%s5264_s14 + $0x50] sm:$0xff] %v2845_v1  ;;  %v2846_v52 = vmax.f32 %v2814_v50, 0.0 }
 0x483   : > { %2875 = vst [vmem:[%s5264_s14 + $0x40] sm:$0xff] %v2843_v62  ;;  %v2844_v28 = vmax.f32 %v2812_v40, 0.0  ;;  %v3506_v17 = vpop.f32.mrb[12].mxu1  ;;  %3582 = vmatprep.mubr.bf16.mxu0 %v2903_v45 }
 0x484   : > { %2878 = vst [vmem:[%s5264_s14 + $0x58] sm:$0xff] %v2846_v52  ;;  %v2399_v14 = vadd.f32 %v3506_v17, %v5248_v37  ;;  %v2390_v24 = vpop.f32.mrb[13].mxu1  ;;  %3583 = vmatmul.mubr.bf16.gmra.mrb[28].mxu0 %v2904_v5 }
 0x485   : > { %2876 = vst [vmem:[%s5264_s14 + $0x48] sm:$0xff] %v2844_v28  ;;  %v2391_v30 = vadd.f32 %v5248_v37, %v2390_v24  ;;  %v3507_v58 = vpop.f32.mrb[14].mxu1 }
 0x486   : > { %v2817_v56 = vadd.f32 %v2733_v26, %v2399_v14  ;;  %v2402_v16 = vadd.f32 %v3507_v58, %v5248_v37  ;;  %v2393_v60 = vpop.f32.mrb[15].mxu1 }
 0x487   : > { %v2815_v47 = vadd.f32 %v2725_v8, %v2391_v30  ;;  %v2394_v3 = vadd.f32 %v5248_v37, %v2393_v60 }
 0x488   : > { %v2849_v48 = vmax.f32 %v2817_v56, 0.0  ;;  %v2906_v39 = vpack.c.bf16 %v2402_v16, %v2399_v14  ;;  %v2818_v32 = vadd.f32 %v2736_v31, %v2402_v16 }
 0x489   : > { %v2847_v59 = vmax.f32 %v2815_v47, 0.0  ;;  %v2905_v44 = vpack.c.bf16 %v2394_v3, %v2391_v30  ;;  %v2816_v6 = vadd.f32 %v2728_v25, %v2394_v3 }
 0x48a   : > { %2881 = vst [vmem:[%s5264_s14 + $0x70] sm:$0xff] %v2849_v48  ;;  %v2850_v43 = vmax.f32 %v2818_v32, 0.0 }
 0x48b   : > { %2879 = vst [vmem:[%s5264_s14 + $0x60] sm:$0xff] %v2847_v59  ;;  %v2848_v29 = vmax.f32 %v2816_v6, 0.0  ;;  %v3510_v35 = vpop.f32.mrb[16].mxu1  ;;  %3586 = vmatprep.mubr.bf16.mxu0 %v2905_v44 }
 0x48c   : > { %2882 = vst [vmem:[%s5264_s14 + $0x78] sm:$0xff] %v2850_v43  ;;  %v2406_v36 = vpop.f32.mrb[17].mxu1  ;;  %3587 = vmatmul.mubr.bf16.gmra.mrb[32].mxu0 %v2906_v39  ;;  %v2415_v21 = vadd.f32 %v3510_v35, %v5248_v37 }
 0x48d   : > { %2880 = vst [vmem:[%s5264_s14 + $0x68] sm:$0xff] %v2848_v29  ;;  %v3511_v53 = vpop.f32.mrb[18].mxu1  ;;  %v2407_v15 = vadd.f32 %v5248_v37, %v2406_v36 }
 0x48e   : > { %v2418_v2 = vadd.f32 %v3511_v53, %v5248_v37  ;;  %v2409_v46 = vpop.f32.mrb[19].mxu1 }
 0x48f   : > { %v2410_v49 = vadd.f32 %v5248_v37, %v2409_v46 }
 0x490   : > { %v2908_v55 = vpack.c.bf16 %v2418_v2, %v2415_v21 }
 0x491   : > { %v2907_v41 = vpack.c.bf16 %v2410_v49, %v2407_v15 }
 0x493   : > { %v3514_v7 = vpop.f32.mrb[20].mxu1  ;;  %3590 = vmatprep.mubr.bf16.mxu0 %v2907_v41 }
 0x494   : > { %v2422_v54 = vpop.f32.mrb[21].mxu1  ;;  %3591 = vmatmul.mubr.bf16.gmra.mrb[36].mxu0 %v2908_v55  ;;  %v2431_v13 = vadd.f32 %v3514_v7, %v5248_v37 }
 0x495   : > { %v3515_v19 = vpop.f32.mrb[22].mxu1  ;;  %v2423_v20 = vadd.f32 %v5248_v37, %v2422_v54 }
 0x496   : > { %v5320_v22 = vadd.f32 %v3515_v19, %v5248_v37  ;;  %v2425_v38 = vpop.f32.mrb[23].mxu1 }
 0x497   : > { %v2426_v0 = vadd.f32 %v5248_v37, %v2425_v38 }
 0x498   : > { %v2910_v51 = vpack.c.bf16 %v5320_v22, %v2431_v13 }
 0x499   : > { %v2909_v63 = vpack.c.bf16 %v2426_v0, %v2423_v20 }
 0x49b   : > { %v3518_v10 = vpop.f32.mrb[24].mxu1  ;;  %3594 = vmatprep.mubr.bf16.mxu0 %v2909_v63 }
 0x49c   : > { %v2438_v61 = vpop.f32.mrb[25].mxu1  ;;  %3595 = vmatmul.mubr.bf16.gmra.mrb[40].mxu0 %v2910_v51  ;;  %v5326_v12 = vadd.f32 %v3518_v10, %v5248_v37 }
 0x49d   : > { %v3519_v11 = vpop.f32.mrb[26].mxu1  ;;  %v5332_v33 = vadd.f32 %v5248_v37, %v2438_v61 }
 0x49e   : > { %v5329_v18 = vadd.f32 %v3519_v11, %v5248_v37  ;;  %v2441_v9 = vpop.f32.mrb[27].mxu1 }
 0x49f   : > { %v5335_v23 = vadd.f32 %v5248_v37, %v2441_v9 }
 0x4a0   : > { %v2912_v34 = vpack.c.bf16 %v5329_v18, %v5326_v12 }
 0x4a1   : > { %v2911_v42 = vpack.c.bf16 %v5335_v23, %v5332_v33 }
 0x4a3   : > { %3598 = vmatprep.mubr.bf16.mxu0 %v2911_v42 }
 0x4a4   : > { %3599 = vmatmul.mubr.bf16.gmra.mrb[44].mxu0 %v2912_v34 }
 0x4a5   : > { %v3522_v27 = vpop.f32.mrb[28].mxu1 }
 0x4a6   : > { %v5342_v57 = vadd.f32 %v3522_v27, %v5248_v37  ;;  %v2454_v1 = vpop.f32.mrb[29].mxu1 }
 0x4a7   : > { %v5345_v5 = vadd.f32 %v5248_v37, %v2454_v1  ;;  %v3523_v50 = vpop.f32.mrb[30].mxu1 }
 0x4a8   : > { %v5348_v62 = vadd.f32 %v3523_v50, %v5248_v37  ;;  %v2457_v45 = vpop.f32.mrb[31].mxu1 }
 0x4a9   : > { %v5351_v40 = vadd.f32 %v5248_v37, %v2457_v45 }
 0x4aa   : > { %v2914_v52 = vpack.c.bf16 %v5348_v62, %v5342_v57 }
 0x4ab   : > { %v2913_v26 = vpack.c.bf16 %v5351_v40, %v5345_v5 }
 0x4ad   : > { %v3544_v28 = vpop.f32.mrb[32].mxu1  ;;  %3602 = vmatprep.mubr.bf16.mxu0 %v2913_v26 }
 0x4ae   : > { %v2749_v17 = vadd.f32 %v3544_v28, %v5243_v4  ;;  %v2740_v8 = vpop.f32.mrb[33].mxu1  ;;  %3603 = vmatmul.mubr.bf16.gmra.mrb[48].mxu0 %v2914_v52 }
 0x4af   : > { %v2741_v14 = vadd.f32 %v5243_v4, %v2740_v8  ;;  %v3545_v24 = vpop.f32.mrb[34].mxu1 }
 0x4b0   : > { %v2821_v37 = vadd.f32 %v2749_v17, %v2415_v21  ;;  %v2752_v31 = vadd.f32 %v3545_v24, %v5243_v4  ;;  %v2743_v30 = vpop.f32.mrb[35].mxu1 }
 0x4b1   : > { %v2819_v58 = vadd.f32 %v2741_v14, %v2407_v15  ;;  %v2744_v25 = vadd.f32 %v5243_v4, %v2743_v30 }
 0x4b2   : > { %v2853_v56 = vmax.f32 %v2821_v37, 0.0  ;;  %v2822_v16 = vadd.f32 %v2752_v31, %v2418_v2 }
 0x4b3   : > { %v2851_v60 = vmax.f32 %v2819_v58, 0.0  ;;  %v2820_v47 = vadd.f32 %v2744_v25, %v2410_v49 }
 0x4b4   : > { %2885 = vst [vmem:[%s5264_s14 + $0x90] sm:$0xff] %v2853_v56  ;;  %v2854_v3 = vmax.f32 %v2822_v16, 0.0 }
 0x4b5   : > { %2883 = vst [vmem:[%s5264_s14 + $0x80] sm:$0xff] %v2851_v60  ;;  %v2852_v48 = vmax.f32 %v2820_v47, 0.0  ;;  %v3548_v39 = vpop.f32.mrb[36].mxu1 }
 0x4b6   : > { %2886 = vst [vmem:[%s5264_s14 + $0x98] sm:$0xff] %v2854_v3  ;;  %v2765_v32 = vadd.f32 %v3548_v39, %v5243_v4  ;;  %v2756_v59 = vpop.f32.mrb[37].mxu1 }
 0x4b7   : > { %2884 = vst [vmem:[%s5264_s14 + $0x88] sm:$0xff] %v2852_v48  ;;  %v2757_v44 = vadd.f32 %v5243_v4, %v2756_v59  ;;  %v3549_v6 = vpop.f32.mrb[38].mxu1 }
 0x4b8   : > { %v2825_v43 = vadd.f32 %v2765_v32, %v2431_v13  ;;  %v2768_v29 = vadd.f32 %v3549_v6, %v5243_v4  ;;  %v2759_v35 = vpop.f32.mrb[39].mxu1 }
 0x4b9   : > { %v2823_v36 = vadd.f32 %v2757_v44, %v2423_v20  ;;  %v2760_v53 = vadd.f32 %v5243_v4, %v2759_v35 }
 0x4ba   : > { %v2857_v21 = vmax.f32 %v2825_v43, 0.0  ;;  %v2826_v2 = vadd.f32 %v2768_v29, %v5320_v22 }
 0x4bb   : > { %v2855_v46 = vmax.f32 %v2823_v36, 0.0  ;;  %v2824_v15 = vadd.f32 %v2760_v53, %v2426_v0 }
 0x4bc   : > { %2889 = vst [vmem:[%s5264_s14 + $0xb0] sm:$0xff] %v2857_v21  ;;  %v2858_v49 = vmax.f32 %v2826_v2, 0.0 }
 0x4bd   : > { %2887 = vst [vmem:[%s5264_s14 + $0xa0] sm:$0xff] %v2855_v46  ;;  %v2856_v55 = vmax.f32 %v2824_v15, 0.0  ;;  %v3552_v41 = vpop.f32.mrb[40].mxu1 }
 0x4be   : > { %2890 = vst [vmem:[%s5264_s14 + $0xb8] sm:$0xff] %v2858_v49  ;;  %v2781_v7 = vadd.f32 %v3552_v41, %v5243_v4  ;;  %v2772_v54 = vpop.f32.mrb[41].mxu1 }
 0x4bf   : > { %2888 = vst [vmem:[%s5264_s14 + $0xa8] sm:$0xff] %v2856_v55  ;;  %v2773_v19 = vadd.f32 %v5243_v4, %v2772_v54  ;;  %v3553_v13 = vpop.f32.mrb[42].mxu1 }
 0x4c0   : > { %v2829_v22 = vadd.f32 %v2781_v7, %v5326_v12  ;;  %v2784_v38 = vadd.f32 %v3553_v13, %v5243_v4  ;;  %v2775_v20 = vpop.f32.mrb[43].mxu1 }
 0x4c1   : > { %v2827_v0 = vadd.f32 %v2773_v19, %v5332_v33  ;;  %v2776_v51 = vadd.f32 %v5243_v4, %v2775_v20 }
 0x4c2   : > { %v2861_v63 = vmax.f32 %v2829_v22, 0.0  ;;  %v2830_v10 = vadd.f32 %v2784_v38, %v5329_v18 }
 0x4c3   : > { %v2859_v61 = vmax.f32 %v2827_v0, 0.0  ;;  %v2828_v11 = vadd.f32 %v2776_v51, %v5335_v23 }
 0x4c4   : > { %2893 = vst [vmem:[%s5264_s14 + $0xd0] sm:$0xff] %v2861_v63  ;;  %v2862_v9 = vmax.f32 %v2830_v10, 0.0 }
 0x4c5   : > { %2891 = vst [vmem:[%s5264_s14 + $0xc0] sm:$0xff] %v2859_v61  ;;  %v2860_v34 = vmax.f32 %v2828_v11, 0.0  ;;  %v3556_v42 = vpop.f32.mrb[44].mxu1 }
 0x4c6   : > { %2894 = vst [vmem:[%s5264_s14 + $0xd8] sm:$0xff] %v2862_v9  ;;  %v2797_v12 = vadd.f32 %v3556_v42, %v5243_v4  ;;  %v2788_v27 = vpop.f32.mrb[45].mxu1 }
 0x4c7   : > { %2892 = vst [vmem:[%s5264_s14 + $0xc8] sm:$0xff] %v2860_v34  ;;  %v2789_v33 = vadd.f32 %v5243_v4, %v2788_v27  ;;  %v3557_v18 = vpop.f32.mrb[46].mxu1 }
 0x4c8   : > { %v2833_v23 = vadd.f32 %v2797_v12, %v5342_v57  ;;  %v2800_v1 = vadd.f32 %v3557_v18, %v5243_v4  ;;  %v2791_v50 = vpop.f32.mrb[47].mxu1 }
 0x4c9   : > { %v2831_v45 = vadd.f32 %v2789_v33, %v5345_v5  ;;  %v2792_v52 = vadd.f32 %v5243_v4, %v2791_v50 }
 0x4ca   : > { %v2865_v26 = vmax.f32 %v2833_v23, 0.0  ;;  %v2834_v28 = vadd.f32 %v2800_v1, %v5348_v62 }
 0x4cb   : > { %v2863_v17 = vmax.f32 %v2831_v45, 0.0  ;;  %v2832_v8 = vadd.f32 %v2792_v52, %v5351_v40 }
 0x4cc   : > { %2897 = vst [vmem:[%s5264_s14 + $0xf0] sm:$0xff] %v2865_v26  ;;  %v2866_v14 = vmax.f32 %v2834_v28, 0.0 }
 0x4cd   : > { %2895 = vst [vmem:[%s5264_s14 + $0xe0] sm:$0xff] %v2863_v17  ;;  %v2864_v57 = vmax.f32 %v2832_v8, 0.0 }
 0x4ce   : > { %2898 = vst [vmem:[%s5264_s14 + $0xf8] sm:$0xff] %v2866_v14 }
 0x4cf   : > { %2896 = vst [vmem:[%s5264_s14 + $0xe8] sm:$0xff] %v2864_v57 }
 0x4d0   : > { %3746 = shalt.err (!%p3743_p3)
}
 0x4d1   : > { %s3747_s26 = scalar_lea.hbm %s5404_s27, 4096  ;;  %s3751_s1 = scalar_lea.hbm %s5534_s8, 8192 }
 0x4d2   : > { %p3748_p4 = scmp.ne.s32.totalorder %s5404_s27, %s3747_s26  ;;  %p3752_p9 = scmp.lt.u32.totalorder %s5404_s27, %s5534_s8 }
 0x4d3   : > { %p3753_p10 = scmp.lt.u32.totalorder %s3751_s1, %s3747_s26  ;;  %p3755_p12 = scmp.lt.u32.totalorder %s3747_s26, %s5404_s27 }
 0x4d4   : > { %p3749_p7 = pnand %p3748_p4, %p3954_p5 }
 0x4d5   : > { %p3754_p11 = por %p3753_p10, %p3752_p9 }
 0x4d6   : > { %p3750_p8 = pneg %p3749_p7 }
 0x4d7   : > { %p3756_p13 = por %p3755_p12, %p3754_p11 }
 0x4d9   : > { %p3757_p0 = pnand %p3756_p13, %p3750_p8 }
 0x4db   : > { %3760 = shalt.err (!%p3757_p0)
}
 0x4dc   : > { %s3864_s22 = smov 128   ;;  %s5438_s23 = scalar_lea.vmem [#allocation4], %s3317_s11 }
 0x4dd   : > { %3613 = dma.vmem_to_hbm [thread:$0]  (%p3954_p5), %s5407_s28, 4096, %s5404_s27, %s3173_s25, %s3864_s22, %s3864_s22, %s5606_s18  }
 0x4de   : > { %s3207_s11 = sshll.u32 %s5438_s23, 4  ;;  %s5476_s25 = scalar_lea.hbm %s5535_s9, %s3415_s16  ;;  %s5478_s11 = int_to_ptr.vmem [resolvable:$true] %s3207_s11 }
 0x4df   : > { %s3178_s24 = scalar_lea.sflag [#allocation5], %s5251_s2  ;;  %s3761_s29 = scalar_lea.vmem %s5478_s11, 4096 }
 0x4e0   : > { %p3762_p1 = scmp.ne.s32.totalorder %s5478_s11, %s3761_s29  ;;  %s3865_s13 = smov [#allocation4]  }
 0x4e1   : > { %s3765_s15 = sshll.u32 %s3865_s13, 4  ;;  %s3766_s15 = int_to_ptr.vmem [resolvable:$false] %s3765_s15 }
 0x4e2   : > { %p3763_p2 = pnand %p3762_p1, %p3954_p5  ;;  %s3767_s26 = scalar_lea.vmem %s3766_s15, 8192 }
 0x4e3   : > { %p3768_p4 = scmp.lt.s32.totalorder %s5478_s11, %s3766_s15  ;;  %p3769_p7 = scmp.lt.s32.totalorder %s3767_s26, %s3761_s29 }
 0x4e4   : > { %p3764_p3 = pneg %p3763_p2 }
 0x4e5   : > { %p3770_p8 = por %p3769_p7, %p3768_p4 }
 0x4e7   : > { %p3771_p9 = pnand %p3770_p8, %p3764_p3 }
 0x547   : > { %v3576_v4 = vpop.f32.mrb[20].mxu0 }
 0x548   : > { %3142 = vst [vmem:[%s5438_s23 + $0x10] sm:$0xff] %v3576_v4  ;;  %v3013_v5 = vpop.f32.mrb[21].mxu0 }
 0x549   : > { %3140 = vst [vmem:[%s5438_s23] sm:$0xff] %v3013_v5  ;;  %v3577_v62 = vpop.f32.mrb[22].mxu0 }
 0x54a   : > { %3143 = vst [vmem:[%s5438_s23 + $0x18] sm:$0xff] %v3577_v62  ;;  %v3016_v40 = vpop.f32.mrb[23].mxu0 }
 0x54b   : > { %3141 = vst [vmem:[%s5438_s23 + $0x8] sm:$0xff] %v3016_v40 }
 0x54f   : > { %v3580_v24 = vpop.f32.mrb[24].mxu0 }
 0x550   : > { %3146 = vst [vmem:[%s5438_s23 + $0x30] sm:$0xff] %v3580_v24  ;;  %v3029_v37 = vpop.f32.mrb[25].mxu0 }
 0x551   : > { %3144 = vst [vmem:[%s5438_s23 + $0x20] sm:$0xff] %v3029_v37  ;;  %v3581_v31 = vpop.f32.mrb[26].mxu0 }
 0x552   : > { %3147 = vst [vmem:[%s5438_s23 + $0x38] sm:$0xff] %v3581_v31  ;;  %v3032_v30 = vpop.f32.mrb[27].mxu0 }
 0x553   : > { %3145 = vst [vmem:[%s5438_s23 + $0x28] sm:$0xff] %v3032_v30 }
 0x557   : > { %v3584_v58 = vpop.f32.mrb[28].mxu0 }
 0x558   : > { %3150 = vst [vmem:[%s5438_s23 + $0x50] sm:$0xff] %v3584_v58  ;;  %v3045_v25 = vpop.f32.mrb[29].mxu0 }
 0x559   : > { %3148 = vst [vmem:[%s5438_s23 + $0x40] sm:$0xff] %v3045_v25  ;;  %v3585_v56 = vpop.f32.mrb[30].mxu0 }
 0x55a   : > { %3151 = vst [vmem:[%s5438_s23 + $0x58] sm:$0xff] %v3585_v56  ;;  %v3048_v16 = vpop.f32.mrb[31].mxu0 }
 0x55b   : > { %3149 = vst [vmem:[%s5438_s23 + $0x48] sm:$0xff] %v3048_v16 }
 0x55f   : > { %v3588_v60 = vpop.f32.mrb[32].mxu0 }
 0x560   : > { %3154 = vst [vmem:[%s5438_s23 + $0x70] sm:$0xff] %v3588_v60  ;;  %v3061_v47 = vpop.f32.mrb[33].mxu0 }
 0x561   : > { %3152 = vst [vmem:[%s5438_s23 + $0x60] sm:$0xff] %v3061_v47  ;;  %v3589_v3 = vpop.f32.mrb[34].mxu0 }
 0x562   : > { %3155 = vst [vmem:[%s5438_s23 + $0x78] sm:$0xff] %v3589_v3  ;;  %v3064_v48 = vpop.f32.mrb[35].mxu0 }
 0x563   : > { %3153 = vst [vmem:[%s5438_s23 + $0x68] sm:$0xff] %v3064_v48 }
 0x567   : > { %v3592_v39 = vpop.f32.mrb[36].mxu0 }
 0x568   : > { %3158 = vst [vmem:[%s5438_s23 + $0x90] sm:$0xff] %v3592_v39  ;;  %v3077_v32 = vpop.f32.mrb[37].mxu0 }
 0x569   : > { %3156 = vst [vmem:[%s5438_s23 + $0x80] sm:$0xff] %v3077_v32  ;;  %v3593_v59 = vpop.f32.mrb[38].mxu0 }
 0x56a   : > { %3159 = vst [vmem:[%s5438_s23 + $0x98] sm:$0xff] %v3593_v59  ;;  %v3080_v44 = vpop.f32.mrb[39].mxu0 }
 0x56b   : > { %3157 = vst [vmem:[%s5438_s23 + $0x88] sm:$0xff] %v3080_v44 }
 0x56f   : > { %v3596_v6 = vpop.f32.mrb[40].mxu0 }
 0x570   : > { %3162 = vst [vmem:[%s5438_s23 + $0xb0] sm:$0xff] %v3596_v6  ;;  %v3093_v43 = vpop.f32.mrb[41].mxu0 }
 0x571   : > { %3160 = vst [vmem:[%s5438_s23 + $0xa0] sm:$0xff] %v3093_v43  ;;  %v3597_v29 = vpop.f32.mrb[42].mxu0 }
 0x572   : > { %3163 = vst [vmem:[%s5438_s23 + $0xb8] sm:$0xff] %v3597_v29  ;;  %v3096_v35 = vpop.f32.mrb[43].mxu0 }
 0x573   : > { %3161 = vst [vmem:[%s5438_s23 + $0xa8] sm:$0xff] %v3096_v35 }
 0x577   : > { %v3600_v36 = vpop.f32.mrb[44].mxu0 }
 0x578   : > { %3166 = vst [vmem:[%s5438_s23 + $0xd0] sm:$0xff] %v3600_v36  ;;  %v3109_v53 = vpop.f32.mrb[45].mxu0 }
 0x579   : > { %3164 = vst [vmem:[%s5438_s23 + $0xc0] sm:$0xff] %v3109_v53  ;;  %v3601_v21 = vpop.f32.mrb[46].mxu0 }
 0x57a   : > { %3167 = vst [vmem:[%s5438_s23 + $0xd8] sm:$0xff] %v3601_v21  ;;  %v3112_v2 = vpop.f32.mrb[47].mxu0 }
 0x57b   : > { %3165 = vst [vmem:[%s5438_s23 + $0xc8] sm:$0xff] %v3112_v2 }
 0x581   : > { %v3604_v46 = vpop.f32.mrb[48].mxu0 }
 0x582   : > { %3170 = vst [vmem:[%s5438_s23 + $0xf0] sm:$0xff] %v3604_v46  ;;  %v3125_v15 = vpop.f32.mrb[49].mxu0 }
 0x583   : > { %3168 = vst [vmem:[%s5438_s23 + $0xe0] sm:$0xff] %v3125_v15  ;;  %v3605_v49 = vpop.f32.mrb[50].mxu0 }
 0x584   : > { %3171 = vst [vmem:[%s5438_s23 + $0xf8] sm:$0xff] %v3605_v49  ;;  %v3128_v55 = vpop.f32.mrb[51].mxu0 }
 0x585   : > { %3169 = vst [vmem:[%s5438_s23 + $0xe8] sm:$0xff] %v3128_v55 }
 0x586   : > { %3774 = shalt.err (!%p3771_p9)
}
 0x587   : > { %s3775_s16 = scalar_lea.hbm %s5476_s25, 4096  ;;  %s3779_s1 = scalar_lea.hbm %s5535_s9, 8192 }
 0x588   : > { %p3776_p10 = scmp.ne.s32.totalorder %s5476_s25, %s3775_s16  ;;  %p3780_p13 = scmp.lt.u32.totalorder %s5476_s25, %s5535_s9 }
 0x589   : > { %p3781_p0 = scmp.lt.u32.totalorder %s3779_s1, %s3775_s16  ;;  %p3783_p2 = scmp.lt.u32.totalorder %s3775_s16, %s5476_s25 }
 0x58a   : > { %p3777_p11 = pnand %p3776_p10, %p3954_p5 }
 0x58b   : > { %p3782_p1 = por %p3781_p0, %p3780_p13 }
 0x58c   : > { %p3778_p12 = pneg %p3777_p11 }
 0x58d   : > { %p3784_p3 = por %p3783_p2, %p3782_p1 }
 0x58f   : > { %p3785_p4 = pnand %p3784_p3, %p3778_p12 }
 0x591   : > { %3788 = shalt.err (!%p3785_p4)
}
 0x592   : > { %3614 = dma.vmem_to_hbm [thread:$0]  (%p3954_p5), %s5478_s11, 4096, %s5476_s25, %s3178_s24, %s3864_s22, %s3864_s22, %s5606_s18  }
 0x593 PF: > { %p3624_p7 = scmp.ge.s32.totalorder %s3827_s12, 2  ;;  %s3222_s23 = sand.u32 1, %s3815_s30  }
 0x594   : > { %s3223_s27 = scalar_lea.sflag [#allocation3], %s3222_s23 }
 0x595   : > { %p3618_p8 = pnand %p3624_p7, %p3958_p6 }
 0x597   : > { %3806 = dma.done.wait (!%p3618_p8), %s3223_s27, 4096  }
 0x598   : > { %3808 = vsyncadd (!%p3618_p8), %s3223_s27, 4294963200  ;;  %s3232_s19 = scalar_lea.sflag [#allocation5], %s3222_s23 }
 0x599   : > { %3810 = dma.done.wait (!%p3618_p8), %s3232_s19, 4096  }
 0x59a   : > { %3812 = vsyncadd (!%p3618_p8), %s3232_s19, 4294963200  ;;  %s5687_s12 = sld [smem:[#allocation9_spill]]  ;;  %s5688_s2 = sld [smem:[#allocation8_spill]] }
 0x59b   : > { %s5689_s11 = sld [smem:[#allocation10_spill]]  ;;  %s5690_s30 = smov %s3819_s10 }
 0x5a0   : > { %p23_p5 = scmp.ge.s32.totalorder %s5687_s12, 4   ;;  %s5691_s10 = smov %s5688_s2 }
 0x5a2   :  { %25 = sbr.rel (!%p23_p5) target bundleno = 9 (0x9), region = 107 }
 0x5a9   :  { %3237 = vsyncpa [#allocation3], 1 }
 0x5aa   :  { %3239 = vsyncpa [#allocation3 + $0x1], 1 }
 0x5ab   :  { %3240 = vsyncpa [#allocation5], 1 }
 0x5ac   :  { %3242 = vsyncpa [#allocation5 + $0x1], 1 }

</bundles_post_ra>
